<compile_context>
chip_gen: v5e
topology: v5e:2x2
jax: 0.10.0
libtpu: 0.0.40
codegen_flags: <defaults>
</compile_context>

<pallas_src>
import functools

import jax
import jax.numpy as jnp
from jax.experimental import pallas as pl
from jax.experimental.pallas import tpu as pltpu


# ----------------------------------------------------------------------------
# graph_embedding stand-in (injected submodule; definition not provided)
# ----------------------------------------------------------------------------
def graph_embedding_stub(node_feat, wg_embed, w_site):
    # TODO(synk): graph_embedding is an externally injected module whose code
    # is not given; deterministic linear + mean-pool stand-in producing
    # (graph_embed, None, siteprediction) with the expected shapes.
    graph_embed = jnp.mean(node_feat @ wg_embed, axis=1)     # (B, D)
    siteprediction = node_feat @ w_site                      # (B, N, NUM_SITE)
    return graph_embed, None, siteprediction


# ----------------------------------------------------------------------------
# Fused Pallas kernel:
#   ionCNN (conv-as-matmul + bias + ReLU + global mean pool)  +  head matmul
# ----------------------------------------------------------------------------
def _fused_graphormer_ion_kernel(x_ref, m_ref, w_ref, b_ref, g_ref, wc_ref,
                                 eye_ref, o_ref, patch_ref, *,
                                 batch, chans, hw, offsets, pad):
    # x_ref:    (B, C, HW + 2*pad)  flat, lane-padded image
    # m_ref:    (9, HW)             per-tap validity masks (0/1)
    # w_ref:    (D, 9*C)            conv weight, tap-major / channel-minor
    # b_ref:    (D, 1)              conv bias (column)
    # g_ref:    (D, B)              graph embedding, transposed
    # wc_ref:   (NC, 2*D)           [Wg | weight*Wi]  (scalar already folded in)
    # eye_ref:  (B, B)              identity, for assembling ion columns
    # o_ref:    (NC, B)             output, transposed
    # patch_ref:(9*C, HW)           VMEM scratch for the im2col tile
    ion_cols = []
    for b in range(batch):                                   # static unroll
        # ---- in-kernel im2col: 9 statically shifted, masked flat views ----
        for idx, s in enumerate(offsets):
            piece = x_ref[b, :, pl.ds(pad + s, hw)]          # (C, HW)
            patch_ref[pl.ds(idx * chans, chans), :] = (
                piece * m_ref[pl.ds(idx, 1), :])
        # ---- conv as one MXU matmul, HW (=256) on the lane axis ----
        z = jnp.dot(w_ref[...], patch_ref[...],
                    preferred_element_type=jnp.float32)      # (D, HW)
        y = jnp.maximum(z + b_ref[...], 0.0)                 # bias + ReLU
        ion_cols.append(jnp.mean(y, axis=1, keepdims=True))  # (D, 1) pool

    # ---- assemble ion columns as (D, B) without narrow lane concats ----
    ion_t = ion_cols[0] * eye_ref[pl.ds(0, 1), :]
    for b in range(1, batch):
        ion_t = ion_t + ion_cols[b] * eye_ref[pl.ds(b, 1), :]

    # ---- fused head:  out^T = [Wg | weight*Wi] @ [g^T ; ion^T] ----
    combined = jnp.concatenate([g_ref[...], ion_t], axis=0)  # (2D, B)
    o_ref[...] = jnp.dot(wc_ref[...], combined,
                         preferred_element_type=jnp.float32)  # (NC, B)


# ----------------------------------------------------------------------------
# Full GraphormerIonCNN forward (one Pallas kernel + thin XLA glue)
# ----------------------------------------------------------------------------
def graphormer_ion_cnn_forward(batched_data, params):
    x = batched_data["ion_maps"]                 # (B, C, H, W)  NCHW
    conv_w = params["conv_w"]                    # (D, C, 3, 3)
    conv_b = params["conv_b"]                    # (D,)
    B, C, H, W = x.shape
    D = conv_w.shape[0]
    HW = H * W
    K = 9 * C
    PAD = W + 1                                  # max |tap offset| in flat index
    NC = params["embed_out_w"].shape[0]

    # TODO(synk): ionCNN class body is not provided; conv+ReLU+global-mean-pool
    # stand-in below produces the expected (B, D) embedding deterministically.

    # graph_embedding is an injected submodule (code not provided) - plain JAX.
    graph_embed, _, siteprediction = graph_embedding_stub(
        batched_data["node_feat"], params["wg_embed"], params["w_site"])

    # --- cheap one-time XLA-side layout prep (no 9x patches array in HBM) ---
    x_ext = jnp.pad(x.reshape(B, C, HW), ((0, 0), (0, 0), (PAD, PAD)))
    w_row = conv_w.transpose(0, 2, 3, 1).reshape(D, K)       # (D, 9C) tap-major
    b_col = conv_b.reshape(D, 1)
    p = jnp.arange(HW)
    hh, ww = p // W, p % W
    offsets, masks = [], []
    for di in (-1, 0, 1):
        for dj in (-1, 0, 1):
            offsets.append(di * W + dj)
            masks.append(((hh + di >= 0) & (hh + di < H) &
                          (ww + dj >= 0) & (ww + dj < W)).astype(jnp.float32))
    masks = jnp.stack(masks, axis=0)                         # (9, HW)
    g_t = graph_embed.T.astype(jnp.float32)                  # (D, B)
    # head Linear(2D -> NC, bias=False): fold the scalar into the ion half.
    w_cat = jnp.concatenate(
        [params["embed_out_w"][:, :D],
         params["weight"] * params["embed_out_w"][:, D:]], axis=1)   # (NC, 2D)
    eye_b = jnp.eye(B, dtype=jnp.float32)

    kernel = functools.partial(
        _fused_graphormer_ion_kernel,
        batch=B, chans=C, hw=HW, offsets=tuple(offsets), pad=PAD)

    out_t = pl.pallas_call(
        kernel,
        out_shape=jax.ShapeDtypeStruct((NC, B), jnp.float32),
        grid_spec=pltpu.PrefetchScalarGridSpec(
            num_scalar_prefetch=0,
            grid=(1,),   # whole (tiny) batch in one step: one launch, no per-step overhead
            in_specs=[
                pl.BlockSpec((B, C, HW + 2 * PAD), lambda i: (0, 0, 0)),
                pl.BlockSpec((9, HW), lambda i: (0, 0)),
                pl.BlockSpec((D, K), lambda i: (0, 0)),
                pl.BlockSpec((D, 1), lambda i: (0, 0)),
                pl.BlockSpec((D, B), lambda i: (0, 0)),
                pl.BlockSpec((NC, 2 * D), lambda i: (0, 0)),
                pl.BlockSpec((B, B), lambda i: (0, 0)),
            ],
            out_specs=pl.BlockSpec((NC, B), lambda i: (0, 0)),
            scratch_shapes=[pltpu.VMEM((K, HW), jnp.float32)],
        ),
        compiler_params=pltpu.CompilerParams(
            dimension_semantics=("arbitrary",)),
    )(x_ext, masks, w_row, b_col, g_t, w_cat, eye_b)

    return out_t.T, siteprediction


# ----------------------------------------------------------------------------
# Pure-JAX reference for correctness check
# ----------------------------------------------------------------------------
def reference_forward(batched_data, params):
    x = batched_data["ion_maps"]
    y = jax.lax.conv_general_dilated(
        x, params["conv_w"], (1, 1), "SAME",
        dimension_numbers=("NCHW", "OIHW", "NCHW"))
    y = jnp.maximum(y + params["conv_b"][None, :, None, None], 0.0)
    ion_out = jnp.mean(y, axis=(2, 3))                       # (B, D)
    graph_embed, _, site = graph_embedding_stub(
        batched_data["node_feat"], params["wg_embed"], params["w_site"])
    combined = jnp.concatenate([graph_embed, ion_out * params["weight"]],
                               axis=1)                       # (B, 2D)
    out = combined @ params["embed_out_w"].T                 # (B, NC)
    return out, site


if __name__ == "__main__":
    # Small shapes consistent with the module's forward pass.
    B, C, H, W = 2, 4, 16, 16        # ionCNN input (NCHW)
    D = 32                            # encoder_embed_dim
    NUM_CLASSES = 16
    N_NODES, F_NODE, NUM_SITE = 8, 24, 4

    key = jax.random.PRNGKey(0)
    ks = jax.random.split(key, 8)

    batched_data = {
        "ion_maps": jax.random.normal(ks[0], (B, C, H, W), jnp.float32),
        "node_feat": jax.random.normal(ks[1], (B, N_NODES, F_NODE), jnp.float32),
    }
    params = {
        # ionCNN stand-in params
        "conv_w": 0.1 * jax.random.normal(ks[2], (D, C, 3, 3), jnp.float32),
        "conv_b": 0.1 * jax.random.normal(ks[3], (D,), jnp.float32),
        # GraphormerIonCNN params
        "weight": jnp.array([0.5], jnp.float32),                       # nn.Parameter(FloatTensor(1))
        "embed_out_w": 0.1 * jax.random.normal(ks[4], (NUM_CLASSES, 2 * D), jnp.float32),  # Linear(2D, NC, bias=False)
        # graph_embedding stand-in params
        "wg_embed": 0.1 * jax.random.normal(ks[5], (F_NODE, D), jnp.float32),
        "w_site": 0.1 * jax.random.normal(ks[6], (F_NODE, NUM_SITE), jnp.float32),
    }

    out, site = graphormer_ion_cnn_forward(batched_data, params)
    out = jax.block_until_ready(out)
    site = jax.block_until_ready(site)

    ref_out, ref_site = reference_forward(batched_data, params)
    assert out.shape == (B, NUM_CLASSES) and site.shape == (B, N_NODES, NUM_SITE)
    assert jnp.allclose(out, ref_out, rtol=1e-4, atol=1e-4), "head mismatch"
    assert jnp.allclose(site, ref_site, rtol=1e-4, atol=1e-4), "site mismatch"

    print("KERNEL_OK")
</pallas_src>

<mosaic_0001>
module attributes {stable_mosaic.version = 11 : i64} {
  func.func @_fused_graphormer_ion_kernel(%arg0: i32, %arg1: memref<2x4x290xf32, #tpu.memory_space<vmem>>, %arg2: memref<9x256xf32, #tpu.memory_space<vmem>>, %arg3: memref<32x36xf32, #tpu.memory_space<vmem>>, %arg4: memref<32x1xf32, #tpu.memory_space<vmem>>, %arg5: memref<32x2xf32, #tpu.memory_space<vmem>>, %arg6: memref<16x64xf32, #tpu.memory_space<vmem>>, %arg7: memref<2x2xf32, #tpu.memory_space<vmem>>, %arg8: memref<16x2xf32, #tpu.memory_space<vmem>>, %arg9: memref<36x256xf32, #tpu.memory_space<vmem>>) attributes {dimension_semantics = [#tpu.dimension_semantics<arbitrary>], iteration_bounds = array<i64: 1>, scalar_prefetch = 0 : i64, scratch_operands = 1 : i64, tpu.core_type = #tpu.core_type<tc>, window_params = [{pipeline_mode = #tpu.pipeline_mode<synchronous>, transform_indices = @transform_0, window_bounds = array<i64: 2, 4, 290>}, {pipeline_mode = #tpu.pipeline_mode<synchronous>, transform_indices = @transform_1, window_bounds = array<i64: 9, 256>}, {pipeline_mode = #tpu.pipeline_mode<synchronous>, transform_indices = @transform_2, window_bounds = array<i64: 32, 36>}, {pipeline_mode = #tpu.pipeline_mode<synchronous>, transform_indices = @transform_3, window_bounds = array<i64: 32, 1>}, {pipeline_mode = #tpu.pipeline_mode<synchronous>, transform_indices = @transform_4, window_bounds = array<i64: 32, 2>}, {pipeline_mode = #tpu.pipeline_mode<synchronous>, transform_indices = @transform_5, window_bounds = array<i64: 16, 64>}, {pipeline_mode = #tpu.pipeline_mode<synchronous>, transform_indices = @transform_6, window_bounds = array<i64: 2, 2>}, {pipeline_mode = #tpu.pipeline_mode<synchronous>, transform_indices = @transform_7, window_bounds = array<i64: 16, 2>}]} {
    %c0 = arith.constant 0 : index
    %c0_0 = arith.constant 0 : index
    %c0_1 = arith.constant 0 : index
    %0 = vector.load %arg1[%c0, %c0_0, %c0_1] : memref<2x4x290xf32, #tpu.memory_space<vmem>>, vector<1x4x256xf32>
    %1 = vector.shape_cast %0 : vector<1x4x256xf32> to vector<4x256xf32>
    %c0_2 = arith.constant 0 : index
    %c0_3 = arith.constant 0 : index
    %2 = vector.load %arg2[%c0_2, %c0_3] : memref<9x256xf32, #tpu.memory_space<vmem>>, vector<1x256xf32>
    %3 = vector.broadcast %2 : vector<1x256xf32> to vector<4x256xf32>
    %4 = arith.mulf %1, %3 : vector<4x256xf32>
    %c0_4 = arith.constant 0 : index
    %c0_5 = arith.constant 0 : index
    %5 = vector.load %arg9[%c0_4, %c0_5] : memref<36x256xf32, #tpu.memory_space<vmem>>, vector<4x256xf32>
    tpu.vector_store %arg9[%c0_4, %c0_5], %4 {strides = array<i32>} : memref<36x256xf32, #tpu.memory_space<vmem>>, vector<4x256xf32>,
    %c0_6 = arith.constant 0 : index
    %c0_7 = arith.constant 0 : index
    %c1 = arith.constant 1 : index
    %6 = vector.load %arg1[%c0_6, %c0_7, %c1] : memref<2x4x290xf32, #tpu.memory_space<vmem>>, vector<1x4x256xf32>
    %7 = vector.shape_cast %6 : vector<1x4x256xf32> to vector<4x256xf32>
    %c1_8 = arith.constant 1 : index
    %c0_9 = arith.constant 0 : index
    %8 = vector.load %arg2[%c1_8, %c0_9] : memref<9x256xf32, #tpu.memory_space<vmem>>, vector<1x256xf32>
    %9 = vector.broadcast %8 : vector<1x256xf32> to vector<4x256xf32>
    %10 = arith.mulf %7, %9 : vector<4x256xf32>
    %c4 = arith.constant 4 : index
    %c0_10 = arith.constant 0 : index
    %11 = vector.load %arg9[%c4, %c0_10] : memref<36x256xf32, #tpu.memory_space<vmem>>, vector<4x256xf32>
    tpu.vector_store %arg9[%c4, %c0_10], %10 {strides = array<i32>} : memref<36x256xf32, #tpu.memory_space<vmem>>, vector<4x256xf32>,
    %c0_11 = arith.constant 0 : index
    %c0_12 = arith.constant 0 : index
    %c2 = arith.constant 2 : index
    %12 = vector.load %arg1[%c0_11, %c0_12, %c2] : memref<2x4x290xf32, #tpu.memory_space<vmem>>, vector<1x4x256xf32>
    %13 = vector.shape_cast %12 : vector<1x4x256xf32> to vector<4x256xf32>
    %c2_13 = arith.constant 2 : index
    %c0_14 = arith.constant 0 : index
    %14 = vector.load %arg2[%c2_13, %c0_14] : memref<9x256xf32, #tpu.memory_space<vmem>>, vector<1x256xf32>
    %15 = vector.broadcast %14 : vector<1x256xf32> to vector<4x256xf32>
    %16 = arith.mulf %13, %15 : vector<4x256xf32>
    %c8 = arith.constant 8 : index
    %c0_15 = arith.constant 0 : index
    %17 = vector.load %arg9[%c8, %c0_15] : memref<36x256xf32, #tpu.memory_space<vmem>>, vector<4x256xf32>
    tpu.vector_store %arg9[%c8, %c0_15], %16 {strides = array<i32>} : memref<36x256xf32, #tpu.memory_space<vmem>>, vector<4x256xf32>,
    %c0_16 = arith.constant 0 : index
    %c0_17 = arith.constant 0 : index
    %c16 = arith.constant 16 : index
    %18 = vector.load %arg1[%c0_16, %c0_17, %c16] : memref<2x4x290xf32, #tpu.memory_space<vmem>>, vector<1x4x256xf32>
    %19 = vector.shape_cast %18 : vector<1x4x256xf32> to vector<4x256xf32>
    %c3 = arith.constant 3 : index
    %c0_18 = arith.constant 0 : index
    %20 = vector.load %arg2[%c3, %c0_18] : memref<9x256xf32, #tpu.memory_space<vmem>>, vector<1x256xf32>
    %21 = vector.broadcast %20 : vector<1x256xf32> to vector<4x256xf32>
    %22 = arith.mulf %19, %21 : vector<4x256xf32>
    %c12 = arith.constant 12 : index
    %c0_19 = arith.constant 0 : index
    %23 = vector.load %arg9[%c12, %c0_19] : memref<36x256xf32, #tpu.memory_space<vmem>>, vector<4x256xf32>
    tpu.vector_store %arg9[%c12, %c0_19], %22 {strides = array<i32>} : memref<36x256xf32, #tpu.memory_space<vmem>>, vector<4x256xf32>,
    %c0_20 = arith.constant 0 : index
    %c0_21 = arith.constant 0 : index
    %c17 = arith.constant 17 : index
    %24 = vector.load %arg1[%c0_20, %c0_21, %c17] : memref<2x4x290xf32, #tpu.memory_space<vmem>>, vector<1x4x256xf32>
    %25 = vector.shape_cast %24 : vector<1x4x256xf32> to vector<4x256xf32>
    %c4_22 = arith.constant 4 : index
    %c0_23 = arith.constant 0 : index
    %26 = vector.load %arg2[%c4_22, %c0_23] : memref<9x256xf32, #tpu.memory_space<vmem>>, vector<1x256xf32>
    %27 = vector.broadcast %26 : vector<1x256xf32> to vector<4x256xf32>
    %28 = arith.mulf %25, %27 : vector<4x256xf32>
    %c16_24 = arith.constant 16 : index
    %c0_25 = arith.constant 0 : index
    %29 = vector.load %arg9[%c16_24, %c0_25] : memref<36x256xf32, #tpu.memory_space<vmem>>, vector<4x256xf32>
    tpu.vector_store %arg9[%c16_24, %c0_25], %28 {strides = array<i32>} : memref<36x256xf32, #tpu.memory_space<vmem>>, vector<4x256xf32>,
    %c0_26 = arith.constant 0 : index
    %c0_27 = arith.constant 0 : index
    %c18 = arith.constant 18 : index
    %30 = vector.load %arg1[%c0_26, %c0_27, %c18] : memref<2x4x290xf32, #tpu.memory_space<vmem>>, vector<1x4x256xf32>
    %31 = vector.shape_cast %30 : vector<1x4x256xf32> to vector<4x256xf32>
    %c5 = arith.constant 5 : index
    %c0_28 = arith.constant 0 : index
    %32 = vector.load %arg2[%c5, %c0_28] : memref<9x256xf32, #tpu.memory_space<vmem>>, vector<1x256xf32>
    %33 = vector.broadcast %32 : vector<1x256xf32> to vector<4x256xf32>
    %34 = arith.mulf %31, %33 : vector<4x256xf32>
    %c20 = arith.constant 20 : index
    %c0_29 = arith.constant 0 : index
    %35 = vector.load %arg9[%c20, %c0_29] : memref<36x256xf32, #tpu.memory_space<vmem>>, vector<4x256xf32>
    tpu.vector_store %arg9[%c20, %c0_29], %34 {strides = array<i32>} : memref<36x256xf32, #tpu.memory_space<vmem>>, vector<4x256xf32>,
    %c0_30 = arith.constant 0 : index
    %c0_31 = arith.constant 0 : index
    %c32 = arith.constant 32 : index
    %36 = vector.load %arg1[%c0_30, %c0_31, %c32] : memref<2x4x290xf32, #tpu.memory_space<vmem>>, vector<1x4x256xf32>
    %37 = vector.shape_cast %36 : vector<1x4x256xf32> to vector<4x256xf32>
    %c6 = arith.constant 6 : index
    %c0_32 = arith.constant 0 : index
    %38 = vector.load %arg2[%c6, %c0_32] : memref<9x256xf32, #tpu.memory_space<vmem>>, vector<1x256xf32>
    %39 = vector.broadcast %38 : vector<1x256xf32> to vector<4x256xf32>
    %40 = arith.mulf %37, %39 : vector<4x256xf32>
    %c24 = arith.constant 24 : index
    %c0_33 = arith.constant 0 : index
    %41 = vector.load %arg9[%c24, %c0_33] : memref<36x256xf32, #tpu.memory_space<vmem>>, vector<4x256xf32>
    tpu.vector_store %arg9[%c24, %c0_33], %40 {strides = array<i32>} : memref<36x256xf32, #tpu.memory_space<vmem>>, vector<4x256xf32>,
    %c0_34 = arith.constant 0 : index
    %c0_35 = arith.constant 0 : index
    %c33 = arith.constant 33 : index
    %42 = vector.load %arg1[%c0_34, %c0_35, %c33] : memref<2x4x290xf32, #tpu.memory_space<vmem>>, vector<1x4x256xf32>
    %43 = vector.shape_cast %42 : vector<1x4x256xf32> to vector<4x256xf32>
    %c7 = arith.constant 7 : index
    %c0_36 = arith.constant 0 : index
    %44 = vector.load %arg2[%c7, %c0_36] : memref<9x256xf32, #tpu.memory_space<vmem>>, vector<1x256xf32>
    %45 = vector.broadcast %44 : vector<1x256xf32> to vector<4x256xf32>
    %46 = arith.mulf %43, %45 : vector<4x256xf32>
    %c28 = arith.constant 28 : index
    %c0_37 = arith.constant 0 : index
    %47 = vector.load %arg9[%c28, %c0_37] : memref<36x256xf32, #tpu.memory_space<vmem>>, vector<4x256xf32>
    tpu.vector_store %arg9[%c28, %c0_37], %46 {strides = array<i32>} : memref<36x256xf32, #tpu.memory_space<vmem>>, vector<4x256xf32>,
    %c0_38 = arith.constant 0 : index
    %c0_39 = arith.constant 0 : index
    %c34 = arith.constant 34 : index
    %48 = vector.load %arg1[%c0_38, %c0_39, %c34] : memref<2x4x290xf32, #tpu.memory_space<vmem>>, vector<1x4x256xf32>
    %49 = vector.shape_cast %48 : vector<1x4x256xf32> to vector<4x256xf32>
    %c8_40 = arith.constant 8 : index
    %c0_41 = arith.constant 0 : index
    %50 = vector.load %arg2[%c8_40, %c0_41] : memref<9x256xf32, #tpu.memory_space<vmem>>, vector<1x256xf32>
    %51 = vector.broadcast %50 : vector<1x256xf32> to vector<4x256xf32>
    %52 = arith.mulf %49, %51 : vector<4x256xf32>
    %c32_42 = arith.constant 32 : index
    %c0_43 = arith.constant 0 : index
    %53 = vector.load %arg9[%c32_42, %c0_43] : memref<36x256xf32, #tpu.memory_space<vmem>>, vector<4x256xf32>
    tpu.vector_store %arg9[%c32_42, %c0_43], %52 {strides = array<i32>} : memref<36x256xf32, #tpu.memory_space<vmem>>, vector<4x256xf32>,
    %c0_44 = arith.constant 0 : index
    %c0_45 = arith.constant 0 : index
    %54 = vector.load %arg3[%c0_44, %c0_45] : memref<32x36xf32, #tpu.memory_space<vmem>>, vector<32x36xf32>
    %c0_46 = arith.constant 0 : index
    %c0_47 = arith.constant 0 : index
    %55 = vector.load %arg9[%c0_46, %c0_47] : memref<36x256xf32, #tpu.memory_space<vmem>>, vector<36x256xf32>
    %cst = arith.constant dense<0.000000e+00> : vector<32x256xf32>
    %56 = tpu.matmul %54, %55, %cst {dimension_numbers = #tpu.dot_dimension_numbers<[1], [0], [0], [1], [0, 0, 1, 1], [], []>} : vector<32x36xf32>, vector<36x256xf32>, vector<32x256xf32> -> vector<32x256xf32>
    %c0_48 = arith.constant 0 : index
    %c0_49 = arith.constant 0 : index
    %57 = vector.load %arg4[%c0_48, %c0_49] : memref<32x1xf32, #tpu.memory_space<vmem>>, vector<32x1xf32>
    %58 = vector.broadcast %57 : vector<32x1xf32> to vector<32x256xf32>
    %59 = arith.addf %56, %58 : vector<32x256xf32>
    %cst_50 = arith.constant 0.000000e+00 : f32
    %60 = vector.broadcast %cst_50 : f32 to vector<32x256xf32>
    %61 = arith.maximumf %59, %60 : vector<32x256xf32>
    %cst_51 = arith.constant dense<0.000000e+00> : vector<32xf32>
    %62 = vector.multi_reduction <add>, %61, %cst_51 [1] : vector<32x256xf32> to vector<32xf32>
    %63 = vector.shape_cast %62 : vector<32xf32> to vector<32x1xf32>
    %cst_52 = arith.constant 2.560000e+02 : f32
    %64 = vector.broadcast %cst_52 : f32 to vector<32x1xf32>
    %65 = arith.divf %63, %64 : vector<32x1xf32>
    %c1_53 = arith.constant 1 : index
    %c0_54 = arith.constant 0 : index
    %c0_55 = arith.constant 0 : index
    %66 = vector.load %arg1[%c1_53, %c0_54, %c0_55] : memref<2x4x290xf32, #tpu.memory_space<vmem>>, vector<1x4x256xf32>
    %67 = vector.shape_cast %66 : vector<1x4x256xf32> to vector<4x256xf32>
    %c0_56 = arith.constant 0 : index
    %c0_57 = arith.constant 0 : index
    %68 = vector.load %arg2[%c0_56, %c0_57] : memref<9x256xf32, #tpu.memory_space<vmem>>, vector<1x256xf32>
    %69 = vector.broadcast %68 : vector<1x256xf32> to vector<4x256xf32>
    %70 = arith.mulf %67, %69 : vector<4x256xf32>
    %c0_58 = arith.constant 0 : index
    %c0_59 = arith.constant 0 : index
    %71 = vector.load %arg9[%c0_58, %c0_59] : memref<36x256xf32, #tpu.memory_space<vmem>>, vector<4x256xf32>
    tpu.vector_store %arg9[%c0_58, %c0_59], %70 {strides = array<i32>} : memref<36x256xf32, #tpu.memory_space<vmem>>, vector<4x256xf32>,
    %c1_60 = arith.constant 1 : index
    %c0_61 = arith.constant 0 : index
    %c1_62 = arith.constant 1 : index
    %72 = vector.load %arg1[%c1_60, %c0_61, %c1_62] : memref<2x4x290xf32, #tpu.memory_space<vmem>>, vector<1x4x256xf32>
    %73 = vector.shape_cast %72 : vector<1x4x256xf32> to vector<4x256xf32>
    %c1_63 = arith.constant 1 : index
    %c0_64 = arith.constant 0 : index
    %74 = vector.load %arg2[%c1_63, %c0_64] : memref<9x256xf32, #tpu.memory_space<vmem>>, vector<1x256xf32>
    %75 = vector.broadcast %74 : vector<1x256xf32> to vector<4x256xf32>
    %76 = arith.mulf %73, %75 : vector<4x256xf32>
    %c4_65 = arith.constant 4 : index
    %c0_66 = arith.constant 0 : index
    %77 = vector.load %arg9[%c4_65, %c0_66] : memref<36x256xf32, #tpu.memory_space<vmem>>, vector<4x256xf32>
    tpu.vector_store %arg9[%c4_65, %c0_66], %76 {strides = array<i32>} : memref<36x256xf32, #tpu.memory_space<vmem>>, vector<4x256xf32>,
    %c1_67 = arith.constant 1 : index
    %c0_68 = arith.constant 0 : index
    %c2_69 = arith.constant 2 : index
    %78 = vector.load %arg1[%c1_67, %c0_68, %c2_69] : memref<2x4x290xf32, #tpu.memory_space<vmem>>, vector<1x4x256xf32>
    %79 = vector.shape_cast %78 : vector<1x4x256xf32> to vector<4x256xf32>
    %c2_70 = arith.constant 2 : index
    %c0_71 = arith.constant 0 : index
    %80 = vector.load %arg2[%c2_70, %c0_71] : memref<9x256xf32, #tpu.memory_space<vmem>>, vector<1x256xf32>
    %81 = vector.broadcast %80 : vector<1x256xf32> to vector<4x256xf32>
    %82 = arith.mulf %79, %81 : vector<4x256xf32>
    %c8_72 = arith.constant 8 : index
    %c0_73 = arith.constant 0 : index
    %83 = vector.load %arg9[%c8_72, %c0_73] : memref<36x256xf32, #tpu.memory_space<vmem>>, vector<4x256xf32>
    tpu.vector_store %arg9[%c8_72, %c0_73], %82 {strides = array<i32>} : memref<36x256xf32, #tpu.memory_space<vmem>>, vector<4x256xf32>,
    %c1_74 = arith.constant 1 : index
    %c0_75 = arith.constant 0 : index
    %c16_76 = arith.constant 16 : index
    %84 = vector.load %arg1[%c1_74, %c0_75, %c16_76] : memref<2x4x290xf32, #tpu.memory_space<vmem>>, vector<1x4x256xf32>
    %85 = vector.shape_cast %84 : vector<1x4x256xf32> to vector<4x256xf32>
    %c3_77 = arith.constant 3 : index
    %c0_78 = arith.constant 0 : index
    %86 = vector.load %arg2[%c3_77, %c0_78] : memref<9x256xf32, #tpu.memory_space<vmem>>, vector<1x256xf32>
    %87 = vector.broadcast %86 : vector<1x256xf32> to vector<4x256xf32>
    %88 = arith.mulf %85, %87 : vector<4x256xf32>
    %c12_79 = arith.constant 12 : index
    %c0_80 = arith.constant 0 : index
    %89 = vector.load %arg9[%c12_79, %c0_80] : memref<36x256xf32, #tpu.memory_space<vmem>>, vector<4x256xf32>
    tpu.vector_store %arg9[%c12_79, %c0_80], %88 {strides = array<i32>} : memref<36x256xf32, #tpu.memory_space<vmem>>, vector<4x256xf32>,
    %c1_81 = arith.constant 1 : index
    %c0_82 = arith.constant 0 : index
    %c17_83 = arith.constant 17 : index
    %90 = vector.load %arg1[%c1_81, %c0_82, %c17_83] : memref<2x4x290xf32, #tpu.memory_space<vmem>>, vector<1x4x256xf32>
    %91 = vector.shape_cast %90 : vector<1x4x256xf32> to vector<4x256xf32>
    %c4_84 = arith.constant 4 : index
    %c0_85 = arith.constant 0 : index
    %92 = vector.load %arg2[%c4_84, %c0_85] : memref<9x256xf32, #tpu.memory_space<vmem>>, vector<1x256xf32>
    %93 = vector.broadcast %92 : vector<1x256xf32> to vector<4x256xf32>
    %94 = arith.mulf %91, %93 : vector<4x256xf32>
    %c16_86 = arith.constant 16 : index
    %c0_87 = arith.constant 0 : index
    %95 = vector.load %arg9[%c16_86, %c0_87] : memref<36x256xf32, #tpu.memory_space<vmem>>, vector<4x256xf32>
    tpu.vector_store %arg9[%c16_86, %c0_87], %94 {strides = array<i32>} : memref<36x256xf32, #tpu.memory_space<vmem>>, vector<4x256xf32>,
    %c1_88 = arith.constant 1 : index
    %c0_89 = arith.constant 0 : index
    %c18_90 = arith.constant 18 : index
    %96 = vector.load %arg1[%c1_88, %c0_89, %c18_90] : memref<2x4x290xf32, #tpu.memory_space<vmem>>, vector<1x4x256xf32>
    %97 = vector.shape_cast %96 : vector<1x4x256xf32> to vector<4x256xf32>
    %c5_91 = arith.constant 5 : index
    %c0_92 = arith.constant 0 : index
    %98 = vector.load %arg2[%c5_91, %c0_92] : memref<9x256xf32, #tpu.memory_space<vmem>>, vector<1x256xf32>
    %99 = vector.broadcast %98 : vector<1x256xf32> to vector<4x256xf32>
    %100 = arith.mulf %97, %99 : vector<4x256xf32>
    %c20_93 = arith.constant 20 : index
    %c0_94 = arith.constant 0 : index
    %101 = vector.load %arg9[%c20_93, %c0_94] : memref<36x256xf32, #tpu.memory_space<vmem>>, vector<4x256xf32>
    tpu.vector_store %arg9[%c20_93, %c0_94], %100 {strides = array<i32>} : memref<36x256xf32, #tpu.memory_space<vmem>>, vector<4x256xf32>,
    %c1_95 = arith.constant 1 : index
    %c0_96 = arith.constant 0 : index
    %c32_97 = arith.constant 32 : index
    %102 = vector.load %arg1[%c1_95, %c0_96, %c32_97] : memref<2x4x290xf32, #tpu.memory_space<vmem>>, vector<1x4x256xf32>
    %103 = vector.shape_cast %102 : vector<1x4x256xf32> to vector<4x256xf32>
    %c6_98 = arith.constant 6 : index
    %c0_99 = arith.constant 0 : index
    %104 = vector.load %arg2[%c6_98, %c0_99] : memref<9x256xf32, #tpu.memory_space<vmem>>, vector<1x256xf32>
    %105 = vector.broadcast %104 : vector<1x256xf32> to vector<4x256xf32>
    %106 = arith.mulf %103, %105 : vector<4x256xf32>
    %c24_100 = arith.constant 24 : index
    %c0_101 = arith.constant 0 : index
    %107 = vector.load %arg9[%c24_100, %c0_101] : memref<36x256xf32, #tpu.memory_space<vmem>>, vector<4x256xf32>
    tpu.vector_store %arg9[%c24_100, %c0_101], %106 {strides = array<i32>} : memref<36x256xf32, #tpu.memory_space<vmem>>, vector<4x256xf32>,
    %c1_102 = arith.constant 1 : index
    %c0_103 = arith.constant 0 : index
    %c33_104 = arith.constant 33 : index
    %108 = vector.load %arg1[%c1_102, %c0_103, %c33_104] : memref<2x4x290xf32, #tpu.memory_space<vmem>>, vector<1x4x256xf32>
    %109 = vector.shape_cast %108 : vector<1x4x256xf32> to vector<4x256xf32>
    %c7_105 = arith.constant 7 : index
    %c0_106 = arith.constant 0 : index
    %110 = vector.load %arg2[%c7_105, %c0_106] : memref<9x256xf32, #tpu.memory_space<vmem>>, vector<1x256xf32>
    %111 = vector.broadcast %110 : vector<1x256xf32> to vector<4x256xf32>
    %112 = arith.mulf %109, %111 : vector<4x256xf32>
    %c28_107 = arith.constant 28 : index
    %c0_108 = arith.constant 0 : index
    %113 = vector.load %arg9[%c28_107, %c0_108] : memref<36x256xf32, #tpu.memory_space<vmem>>, vector<4x256xf32>
    tpu.vector_store %arg9[%c28_107, %c0_108], %112 {strides = array<i32>} : memref<36x256xf32, #tpu.memory_space<vmem>>, vector<4x256xf32>,
    %c1_109 = arith.constant 1 : index
    %c0_110 = arith.constant 0 : index
    %c34_111 = arith.constant 34 : index
    %114 = vector.load %arg1[%c1_109, %c0_110, %c34_111] : memref<2x4x290xf32, #tpu.memory_space<vmem>>, vector<1x4x256xf32>
    %115 = vector.shape_cast %114 : vector<1x4x256xf32> to vector<4x256xf32>
    %c8_112 = arith.constant 8 : index
    %c0_113 = arith.constant 0 : index
    %116 = vector.load %arg2[%c8_112, %c0_113] : memref<9x256xf32, #tpu.memory_space<vmem>>, vector<1x256xf32>
    %117 = vector.broadcast %116 : vector<1x256xf32> to vector<4x256xf32>
    %118 = arith.mulf %115, %117 : vector<4x256xf32>
    %c32_114 = arith.constant 32 : index
    %c0_115 = arith.constant 0 : index
    %119 = vector.load %arg9[%c32_114, %c0_115] : memref<36x256xf32, #tpu.memory_space<vmem>>, vector<4x256xf32>
    tpu.vector_store %arg9[%c32_114, %c0_115], %118 {strides = array<i32>} : memref<36x256xf32, #tpu.memory_space<vmem>>, vector<4x256xf32>,
    %c0_116 = arith.constant 0 : index
    %c0_117 = arith.constant 0 : index
    %120 = vector.load %arg3[%c0_116, %c0_117] : memref<32x36xf32, #tpu.memory_space<vmem>>, vector<32x36xf32>
    %c0_118 = arith.constant 0 : index
    %c0_119 = arith.constant 0 : index
    %121 = vector.load %arg9[%c0_118, %c0_119] : memref<36x256xf32, #tpu.memory_space<vmem>>, vector<36x256xf32>
    %cst_120 = arith.constant dense<0.000000e+00> : vector<32x256xf32>
    %122 = tpu.matmul %120, %121, %cst_120 {dimension_numbers = #tpu.dot_dimension_numbers<[1], [0], [0], [1], [0, 0, 1, 1], [], []>} : vector<32x36xf32>, vector<36x256xf32>, vector<32x256xf32> -> vector<32x256xf32>
    %c0_121 = arith.constant 0 : index
    %c0_122 = arith.constant 0 : index
    %123 = vector.load %arg4[%c0_121, %c0_122] : memref<32x1xf32, #tpu.memory_space<vmem>>, vector<32x1xf32>
    %124 = vector.broadcast %123 : vector<32x1xf32> to vector<32x256xf32>
    %125 = arith.addf %122, %124 : vector<32x256xf32>
    %cst_123 = arith.constant 0.000000e+00 : f32
    %126 = vector.broadcast %cst_123 : f32 to vector<32x256xf32>
    %127 = arith.maximumf %125, %126 : vector<32x256xf32>
    %cst_124 = arith.constant dense<0.000000e+00> : vector<32xf32>
    %128 = vector.multi_reduction <add>, %127, %cst_124 [1] : vector<32x256xf32> to vector<32xf32>
    %129 = vector.shape_cast %128 : vector<32xf32> to vector<32x1xf32>
    %cst_125 = arith.constant 2.560000e+02 : f32
    %130 = vector.broadcast %cst_125 : f32 to vector<32x1xf32>
    %131 = arith.divf %129, %130 : vector<32x1xf32>
    %c0_126 = arith.constant 0 : index
    %c0_127 = arith.constant 0 : index
    %132 = vector.load %arg7[%c0_126, %c0_127] : memref<2x2xf32, #tpu.memory_space<vmem>>, vector<1x2xf32>
    %133 = vector.broadcast %65 : vector<32x1xf32> to vector<32x2xf32>
    %134 = vector.broadcast %132 : vector<1x2xf32> to vector<32x2xf32>
    %135 = arith.mulf %133, %134 : vector<32x2xf32>
    %c1_128 = arith.constant 1 : index
    %c0_129 = arith.constant 0 : index
    %136 = vector.load %arg7[%c1_128, %c0_129] : memref<2x2xf32, #tpu.memory_space<vmem>>, vector<1x2xf32>
    %137 = vector.broadcast %131 : vector<32x1xf32> to vector<32x2xf32>
    %138 = vector.broadcast %136 : vector<1x2xf32> to vector<32x2xf32>
    %139 = arith.mulf %137, %138 : vector<32x2xf32>
    %140 = arith.addf %135, %139 : vector<32x2xf32>
    %c0_130 = arith.constant 0 : index
    %c0_131 = arith.constant 0 : index
    %141 = vector.load %arg5[%c0_130, %c0_131] : memref<32x2xf32, #tpu.memory_space<vmem>>, vector<32x2xf32>
    %142 = tpu.concatenate %141, %140 in 0 : vector<32x2xf32>, vector<32x2xf32> -> vector<64x2xf32>
    %c0_132 = arith.constant 0 : index
    %c0_133 = arith.constant 0 : index
    %143 = vector.load %arg6[%c0_132, %c0_133] : memref<16x64xf32, #tpu.memory_space<vmem>>, vector<16x64xf32>
    %cst_134 = arith.constant dense<0.000000e+00> : vector<16x2xf32>
    %144 = tpu.matmul %143, %142, %cst_134 {dimension_numbers = #tpu.dot_dimension_numbers<[1], [0], [0], [1], [0, 0, 1, 1], [], []>} : vector<16x64xf32>, vector<64x2xf32>, vector<16x2xf32> -> vector<16x2xf32>
    %c0_135 = arith.constant 0 : index
    %c0_136 = arith.constant 0 : index
    %145 = vector.load %arg8[%c0_135, %c0_136] : memref<16x2xf32, #tpu.memory_space<vmem>>, vector<16x2xf32>
    tpu.vector_store %arg8[%c0_135, %c0_136], %144 {strides = array<i32>} : memref<16x2xf32, #tpu.memory_space<vmem>>, vector<16x2xf32>,
    return
  }
  func.func @transform_0(%arg0: i32) -> (i32, i32, i32) {
    %c0_i32 = arith.constant 0 : i32
    %c0_i32_0 = arith.constant 0 : i32
    %c0_i32_1 = arith.constant 0 : i32
    %c0_i32_2 = arith.constant 0 : i32
    return %c0_i32, %c0_i32_0, %c0_i32_1 : i32, i32, i32
  }
  func.func @transform_1(%arg0: i32) -> (i32, i32) {
    %c0_i32 = arith.constant 0 : i32
    %c0_i32_0 = arith.constant 0 : i32
    %c0_i32_1 = arith.constant 0 : i32
    return %c0_i32, %c0_i32_0 : i32, i32
  }
  func.func @transform_2(%arg0: i32) -> (i32, i32) {
    %c0_i32 = arith.constant 0 : i32
    %c0_i32_0 = arith.constant 0 : i32
    %c0_i32_1 = arith.constant 0 : i32
    return %c0_i32, %c0_i32_0 : i32, i32
  }
  func.func @transform_3(%arg0: i32) -> (i32, i32) {
    %c0_i32 = arith.constant 0 : i32
    %c0_i32_0 = arith.constant 0 : i32
    %c0_i32_1 = arith.constant 0 : i32
    return %c0_i32, %c0_i32_0 : i32, i32
  }
  func.func @transform_4(%arg0: i32) -> (i32, i32) {
    %c0_i32 = arith.constant 0 : i32
    %c0_i32_0 = arith.constant 0 : i32
    %c0_i32_1 = arith.constant 0 : i32
    return %c0_i32, %c0_i32_0 : i32, i32
  }
  func.func @transform_5(%arg0: i32) -> (i32, i32) {
    %c0_i32 = arith.constant 0 : i32
    %c0_i32_0 = arith.constant 0 : i32
    %c0_i32_1 = arith.constant 0 : i32
    return %c0_i32, %c0_i32_0 : i32, i32
  }
  func.func @transform_6(%arg0: i32) -> (i32, i32) {
    %c0_i32 = arith.constant 0 : i32
    %c0_i32_0 = arith.constant 0 : i32
    %c0_i32_1 = arith.constant 0 : i32
    return %c0_i32, %c0_i32_0 : i32, i32
  }
  func.func @transform_7(%arg0: i32) -> (i32, i32) {
    %c0_i32 = arith.constant 0 : i32
    %c0_i32_0 = arith.constant 0 : i32
    %c0_i32_1 = arith.constant 0 : i32
    return %c0_i32, %c0_i32_0 : i32, i32
  }
}

</mosaic_0001>

<bundles_post_ra>
// kernel: tpu_custom_call.1
= control target key start
LH: loop header
LB: loop body
LE: loop exit
PB: predicated region body
PF: predicated region fallthrough
CT: control target
= control target key end

     0   :  { %12 = vsyncpa [#allocation4], 0  ;;  %s1569_s0 = inlined_call_operand.hbm [shape: f32[2,4,290], index: 0, kind: input, shape index: {}]   ;;  %s1570_s1 = inlined_call_operand.vmem [shape: f32[9,256], index: 1, kind: input, shape index: {}]   ;;  %s1571_s2 = inlined_call_operand.vmem [shape: f32[32,36], index: 2, kind: input, shape index: {}]   ;;  %s1572_s3 = inlined_call_operand.vmem [shape: f32[32,1], index: 3, kind: input, shape index: {}]   ;;  %s1573_s4 = inlined_call_operand.vmem [shape: f32[32,2], index: 4, kind: input, shape index: {}]   ;;  %s1574_s5 = inlined_call_operand.hbm [shape: f32[16,64], index: 5, kind: input, shape index: {}]   ;;  %s1575_s6 = inlined_call_operand.vmem [shape: f32[2,2], index: 6, kind: input, shape index: {}]   ;;  %s1576_s7 = inlined_call_operand.vmem [shape: f32[16,2], index: 7, kind: output, shape index: {}]  }
   0x1   :  { %s18_s26 = sshll.u32 %s1569_s0, 4  ;;  %s19_s26 = int_to_ptr.hbm [resolvable:$true] %s18_s26 }
   0x2   :  { %13 = vsyncpa [#allocation6], 0  ;;  %s1175_s27 = smov [#allocation3]   ;;  %s39_s8 = sshll.u32 %s1574_s5, 4  ;;  %s40_s8 = int_to_ptr.hbm [resolvable:$true] %s39_s8 }
   0x3   :  { %s20_s28 = sshll.u32 %s1175_s27, 4  ;;  %s1176_s9 = smov 192   ;;  %s21_s28 = int_to_ptr.vmem [resolvable:$true] %s20_s28 }
   0x4   :  { %s1177_s10 = smov 12   ;;  %s1178_s11 = smov [#allocation5]  }
   0x5   :  { %26 = dma.hbm_to_vmem [thread:$0]  %s19_s26, 384, %s21_s28, [#allocation4], %s1176_s9, %s1176_s9, %s1177_s10  }
   0x6   :  { %s41_s12 = sshll.u32 %s1178_s11, 4  ;;  %s1179_s13 = smov 128   ;;  %s42_s12 = int_to_ptr.vmem [resolvable:$true] %s41_s12 }
   0x7   :  { %s1180_s14 = smov 8  }
   0x8   :  { %47 = dma.hbm_to_vmem [thread:$0]  %s40_s8, 256, %s42_s12, [#allocation6], %s1179_s13, %s1179_s13, %s1180_s14  }
   0x9   :  { %1171 = dma.done.wait [#allocation4], 384  }
   0xa   :  { %1172 = vsyncadd [#allocation4], 4294966912 }
   0xb   :  { %1173 = dma.done.wait [#allocation6], 256  }
   0xc   :  { %1174 = vsyncadd [#allocation6], 4294967040  ;;  %v1046_v0 = vld [vmem:[%s1570_s1 + $0x1] ss:$8 sm:$0x3]  ;;  %vm64_vm0 = vcmask 1043456  }
   0xd   :  { %v81_v1 = vperm.slane %v1046_v0, 0  ;;  %v82_v2 = vperm.slane %v1046_v0, 1  ;;  %v1047_v3 = vld [vmem:[%s1570_s1 + $0x2] ss:$8 sm:$0x3]  ;;  %s1181_s21 = smov 1  }
   0xe   :  { %v122_v5 = vperm.slane %v1047_v3, 1  ;;  %v1048_v6 = vld [vmem:[%s1570_s1 + $0x3] ss:$8 sm:$0x3]  ;;  %v121_v14 = vperm.slane %v1047_v3, 0  ;;  %s1182_s28 = smov 16  }
   0xf   :  { %v83_v4 = vrot.slane %v82_v2, 4  ;;  %v160_v7 = vperm.slane %v1048_v6, 0  ;;  %v161_v8 = vperm.slane %v1048_v6, 1  ;;  %v1049_v9 = vld [vmem:[%s1570_s1 + $0x4] ss:$8 sm:$0x3] }
  0x10   :  { %v201_v12 = vperm.slane %v1049_v9, 1  ;;  %v1050_v13 = vld [vmem:[%s1570_s1 + $0x5] ss:$8 sm:$0x3]  ;;  %v123_v15 = vrot.slane %v122_v5, 4  ;;  %v200_v21 = vperm.slane %v1049_v9, 0 }
  0x11   :  { %v84_v10 = vsel %vm64_vm0, %v81_v1, %v83_v4  ;;  %v162_v11 = vrot.slane %v161_v8, 4  ;;  %v1052_v16 = vld [vmem:[%s1570_s1 + $0x7] ss:$8 sm:$0x3]  ;;  %v239_v18 = vperm.slane %v1050_v13, 0  ;;  %v240_v19 = vperm.slane %v1050_v13, 1 }
  0x12   :  { %85 = vrot.lane.b32.xlu0 %v84_v10, %s1181_s21  ;;  %v1051_v20 = vld [vmem:[%s1570_s1 + $0x6] ss:$8 sm:$0x3]  ;;  %v202_v22 = vrot.slane %v201_v12, 4  ;;  %v124_v25 = vsel %vm64_vm0, %v121_v14, %v123_v15  ;;  %v319_v26 = vperm.slane %v1052_v16, 1  ;;  %s1183_s8 = smov 18  }
  0x13   :  { %v163_v17 = vsel %vm64_vm0, %v160_v7, %v162_v11  ;;  %v241_v23 = vrot.slane %v240_v19, 4  ;;  %v280_v24 = vperm.slane %v1051_v20, 1  ;;  %v1053_v27 = vld [vmem:[%s1570_s1 + $0x10] ss:$8 sm:$0x3]  ;;  %s1184_s9 = smov 2  }
  0x14   :  { %164 = vrot.lane.b32.xlu1 %v163_v17, %s1182_s28  ;;  %v203_v29 = vsel %vm64_vm0, %v200_v21, %v202_v22  ;;  %v359_v30 = vperm.slane %v1053_v27, 1  ;;  %v279_v31 = vperm.slane %v1051_v20, 0  ;;  %v318_v33 = vperm.slane %v1052_v16, 0  ;;  %v1064_v35 = vld [vmem:[%s1570_s1 + $0x1] ss:$8 sm:$0x3] }
  0x15   :  { %v242_v28 = vsel %vm64_vm0, %v239_v18, %v241_v23  ;;  %v281_v32 = vrot.slane %v280_v24, 4  ;;  %v320_v34 = vrot.slane %v319_v26, 4  ;;  %v1065_v36 = vld [vmem:[%s1570_s1 + $0x2] ss:$8 sm:$0x3]  ;;  %s1185_s14 = smov 17  }
  0x16   :  { %243 = vrot.lane.b32.xlu2 %v242_v28, %s1183_s8  ;;  %v358_v37 = vperm.slane %v1053_v27, 0  ;;  %v360_v38 = vrot.slane %v359_v30, 4  ;;  %v561_v40 = vperm.slane %v1064_v35, 1  ;;  %v598_v42 = vperm.slane %v1065_v36, 1  ;;  %s1186_s5 = smov 32   ;;  %s1187_s16 = smov 33  }
  0x17   :  { %v282_v39 = vsel %vm64_vm0, %v279_v31, %v281_v32  ;;  %v321_v41 = vsel %vm64_vm0, %v318_v33, %v320_v34  ;;  %v1066_v43 = vld [vmem:[%s1570_s1 + $0x3] ss:$8 sm:$0x3]  ;;  %v560_v46 = vperm.slane %v1064_v35, 0  ;;  %v597_v48 = vperm.slane %v1065_v36, 0  ;;  %s1188_s22 = smov 34  }
  0x18   :  { %v361_v44 = vsel %vm64_vm0, %v358_v37, %v360_v38  ;;  %v634_v45 = vperm.slane %v1066_v43, 1  ;;  %v562_v47 = vrot.slane %v561_v40, 4  ;;  %v599_v49 = vrot.slane %v598_v42, 4  ;;  %v1067_v50 = vld [vmem:[%s1570_s1 + $0x4] ss:$8 sm:$0x3] }
  0x19   :  { %v1068_v51 = vld [vmem:[%s1570_s1 + $0x5] ss:$8 sm:$0x3]  ;;  %v633_v52 = vperm.slane %v1066_v43, 0  ;;  %v671_v55 = vperm.slane %v1067_v50, 1  ;;  %v670_v61 = vperm.slane %v1067_v50, 0 }
  0x1a   :  { %125 = vrot.lane.b32.xlu0 %v124_v25, %s1184_s9  ;;  %v635_v53 = vrot.slane %v634_v45, 4  ;;  %v563_v54 = vsel %vm64_vm0, %v560_v46, %v562_v47  ;;  %v600_v56 = vsel %vm64_vm0, %v597_v48, %v599_v49  ;;  %v707_v57 = vperm.slane %v1068_v51, 1  ;;  %v1069_v58 = vld [vmem:[%s1570_s1 + $0x6] ss:$8 sm:$0x3]  ;;  %v1318_v10 = vld [vmem:[#allocation3] sm:$0xff] }
  0x1b   :  { %v744_v60 = vperm.slane %v1069_v58, 1  ;;  %v672_v62 = vrot.slane %v671_v55, 4  ;;  %v706_v63 = vperm.slane %v1068_v51, 0  ;;  %v743_v1 = vperm.slane %v1069_v58, 0  ;;  %v77_v26 = vld [vmem:[#allocation3 + $0x8] sm:$0xf] }
  0x1c   :  { %204 = vrot.lane.b32.xlu1 %v203_v29, %s1185_s14  ;;  %v636_v59 = vsel %vm64_vm0, %v633_v52, %v635_v53  ;;  %v708_v0 = vrot.slane %v707_v57, 4  ;;  %v59_v6 = vld [vmem:[%s1570_s1] ss:$8 sm:$0x3]  ;;  %vm88_vm1 = vcmask 7168   ;;  %vm128_vm2 = vcmask 15360  }
  0x1d   :  { %v745_v2 = vrot.slane %v744_v60, 4  ;;  %v673_v3 = vsel %vm64_vm0, %v670_v61, %v672_v62  ;;  %v62_v7 = vperm.slane %v59_v6, 1  ;;  %v61_v8 = vperm.slane %v59_v6, 0  ;;  %v1071_v13 = vld [vmem:[%s1570_s1 + $0x10] ss:$8 sm:$0x3] }
  0x1e   :  { %283 = vrot.lane.b32.xlu2 %v282_v39, %s1186_s5  ;;  %v709_v4 = vsel %vm64_vm0, %v706_v63, %v708_v0  ;;  %v817_v14 = vperm.slane %v1071_v13, 1  ;;  %v1070_v15 = vld [vmem:[%s1570_s1 + $0x7] ss:$8 sm:$0x3]  ;;  %v816_v17 = vperm.slane %v1071_v13, 0  ;;  %s1189_s30 = smov 127  }
  0x1f   :  { %v746_v5 = vsel %vm64_vm0, %v743_v1, %v745_v2  ;;  %v63_v9 = vrot.slane %v62_v7, 4  ;;  %v780_v16 = vperm.slane %v1070_v15, 1  ;;  %v779_v19 = vperm.slane %v1070_v15, 0  ;;  %v117_v32 = vld [vmem:[#allocation3 + $0x8] sm:$0xf]  ;;  %s1192_s10 = smov 111  }
  0x20   :  { %v818_v18 = vrot.slane %v817_v14, 4  ;;  %vm167_vm3 = vcmask 130048   ;;  %v156_v42 = vld [vmem:[#allocation3 + $0x8] sm:$0xf]  ;;  %vm207_vm4 = vcmask 138240   ;;  %vm246_vm5 = vcmask 146432  }
  0x21   :  { %v65_v11 = vsel %vm64_vm0, %v61_v8, %v63_v9  ;;  %v781_v20 = vrot.slane %v780_v16, 4  ;;  %v196_v52 = vld [vmem:[#allocation3 + $0x8] sm:$0xf]  ;;  %vm286_vm6 = vcmask 261120   ;;  %vm325_vm7 = vcmask 269312   ;;  %s1193_s11 = smov 110  }
  0x22   :  { %322 = vrot.lane.b32.xlu0 %v321_v41, %s1187_s16  ;;  %v67_v12 = vmul.f32 %v65_v11, %v1318_v10  ;;  %v819_v21 = vsel %vm64_vm0, %v816_v17, %v818_v18  ;;  %v235_v60 = vld [vmem:[#allocation3 + $0x8] sm:$0xf]  ;;  %vm365_vm8 = vcmask 277504   ;;  %s1196_s0 = smov 94   ;;  %vm109_vm9 = vcmask 1039360  }
  0x23   :  { %v782_v23 = vsel %vm64_vm0, %v779_v19, %v781_v20  ;;  %v314_v15 = vld [vmem:[#allocation3 + $0x8] sm:$0xf]  ;;  %vm148_vm10 = vcmask 1031168   ;;  %vm188_vm11 = vcmask 916480   ;;  %vm227_vm12 = vcmask 908288  }
  0x24   :  { %362 = vrot.lane.b32.xlu1 %v361_v44, %s1188_s22  ;;  %69 = vst [vmem:[#allocation1] ss:$2 sm:$0xff] %v67_v12  ;;  %v540_v19 = vld [vmem:[%s1570_s1] ss:$8 sm:$0x3]  ;;  %s1195_s1 = smov 95  }
  0x25   :  { %vm267_vm13 = vcmask 900096   ;;  %vm306_vm14 = vcmask 785408   ;;  %vm346_vm15 = vcmask 777216  }
  0x26   :  { %564 = vrot.lane.b32.xlu2 %v563_v54, %s1181_s21 }
  0x2a   :  { %601 = vrot.lane.b32.xlu0 %v600_v56, %s1184_s9  ;;  %s1191_s9 = smov 112  }
  0x2b   :  { %v70_v22 = vld.sshfl [vmem:[#allocation1] sm:$0xff pattern:$0x75316420]  ;;  %v71_v24 = vld.sshfl [vmem:[#allocation1 + $0x8] sm:$0xff pattern:$0x75316420] }
  0x2c   :  { %637 = vrot.lane.b32.xlu1 %v636_v59, %s1182_s28  ;;  %74 = vst [vmem:[#allocation2 + $0x30] sm:$0xf] %v70_v22 }
  0x2d   :  { %75 = vst [vmem:[#allocation2] sm:$0xf] %v71_v24 }
  0x2e   :  { %674 = vrot.lane.b32.xlu2 %v673_v3, %s1185_s14  ;;  %s1194_s14 = smov 96  }
  0x32   :  { %710 = vrot.lane.b32.xlu0 %v709_v4, %s1183_s8  ;;  %s1190_s8 = smov 126  }
  0x34   :  { %747 = vrot.lane.b32.xlu1 %v746_v5, %s1186_s5  ;;  %v275_v5 = vld [vmem:[#allocation3 + $0x8] sm:$0xf] }
  0x36   :  { %783 = vrot.lane.b32.xlu2 %v782_v23, %s1187_s16 }
  0x3a   :  { %820 = vrot.lane.b32.xlu0 %v819_v21, %s1188_s22 }
  0x70   :  { %v244_v51 = vpop.permute.xlu2 %243 }
  0x71   :  { %v245_v56 = vrot.slane %v244_v51, 4 }
  0x73   :  { %v247_v61 = vsel %vm246_vm5, %v245_v56, %v244_v51  ;;  %v251_v63 = vmul.f32 %v245_v56, %v235_v60  ;;  %v630_v56 = vld [vmem:[#allocation3 + $0x14] sm:$0xf] }
  0x74   :  { %v250_v0 = vmul.f32 %v247_v61, %v1318_v10 }
  0x78   :  { %v284_v62 = vpop.permute.xlu2 %283 }
  0x79   :  { %v285_v1 = vrot.slane %v284_v62, 4 }
  0x7b   :  { %v287_v6 = vsel %vm286_vm6, %v285_v1, %v284_v62  ;;  %v291_v8 = vmul.f32 %v285_v1, %v275_v5 }
  0x7c   :  { %v290_v9 = vmul.f32 %v287_v6, %v1318_v10 }
  0x84   :  { %v86_v25 = vpop.permute.xlu0 %85 }
  0x85   :  { %v87_v27 = vrot.slane %v86_v25, 4 }
  0x86   :  { %v165_v31 = vpop.permute.xlu1 %164 }
  0x87   :  { %v89_v28 = vsel %vm88_vm1, %v87_v27, %v86_v25  ;;  %v93_v29 = vmul.f32 %v87_v27, %v77_v26  ;;  %v166_v39 = vrot.slane %v165_v31, 4  ;;  %v543_v25 = vperm.slane %v540_v19, 1  ;;  %v354_v26 = vld [vmem:[#allocation3 + $0x8] sm:$0xf] }
  0x88   :  { %v92_v30 = vmul.f32 %v89_v28, %v1318_v10  ;;  %v542_v28 = vperm.slane %v540_v19, 0 }
  0x89   :  { %99 = vst [vmem:[#allocation1 + $0x11] ss:$2 sm:$0xff] %v93_v29  ;;  %v168_v43 = vsel %vm167_vm3, %v166_v39, %v165_v31  ;;  %v172_v45 = vmul.f32 %v166_v39, %v156_v42  ;;  %v544_v29 = vrot.slane %v543_v25, 4  ;;  %v557_v39 = vld [vmem:[#allocation3 + $0x14] sm:$0xf] }
  0x8a   :  { %97 = vst [vmem:[#allocation1 + $0x1] ss:$2 sm:$0xff] %v92_v30  ;;  %v171_v46 = vmul.f32 %v168_v43, %v1318_v10 }
  0x8c   :  { %v126_v33 = vpop.permute.xlu0 %125 }
  0x8d   :  { %v127_v34 = vrot.slane %v126_v33, 4 }
  0x8e   :  { %v205_v44 = vpop.permute.xlu1 %204 }
  0x8f   :  { %v129_v35 = vsel %vm128_vm2, %v127_v34, %v126_v33  ;;  %v133_v36 = vmul.f32 %v127_v34, %v117_v32  ;;  %v206_v47 = vrot.slane %v205_v44, 4  ;;  %v565_v32 = vpop.permute.xlu2 %564 }
  0x90   :  { %v102_v37 = vld.sshfl [vmem:[#allocation1 + $0x10] sm:$0xff pattern:$0x75316420]  ;;  %v132_v38 = vmul.f32 %v129_v35, %v1318_v10 }
  0x91   :  { %v100_v40 = vld.sshfl [vmem:[#allocation1] sm:$0xff pattern:$0x75316420]  ;;  %v101_v41 = vld.sshfl [vmem:[#allocation1 + $0x8] sm:$0xff pattern:$0x75316420]  ;;  %107 = vrot.lane.b32.xlu0 %v102_v37, %s1189_s30  ;;  %v208_v53 = vsel %vm207_vm4, %v206_v47, %v205_v44  ;;  %v212_v54 = vmul.f32 %v206_v47, %v196_v52  ;;  %v545_v37 = vsel %vm64_vm0, %v542_v28, %v544_v29 }
  0x92   :  { %136 = vst [vmem:[#allocation1] ss:$2 sm:$0xff] %v132_v38  ;;  %105 = vrot.lane.b32.xlu2 %v101_v41, %s1189_s30  ;;  %103 = vrot.lane.b32.xlu1 %v100_v40, %s1189_s30  ;;  %v211_v55 = vmul.f32 %v208_v53, %v1318_v10  ;;  %v566_v38 = vrot.slane %v565_v32, 4 }
  0x93   :  { %138 = vst [vmem:[#allocation1 + $0x10] ss:$2 sm:$0xff] %v133_v36  ;;  %v1371_v36 = vld [vmem:[#allocation3 + $0xc] sm:$0xff] }
  0x94   :  { %v323_v7 = vpop.permute.xlu0 %322  ;;  %v571_v40 = vmul.f32 %v566_v38, %v557_v39  ;;  %v567_v47 = vsel %vm88_vm1, %v566_v38, %v565_v32  ;;  %vm385_vm1 = vcmask 769024  }
  0x95   :  { %v324_v11 = vrot.slane %v323_v7, 4 }
  0x96   :  { %v363_v17 = vpop.permute.xlu1 %362 }
  0x97   :  { %v326_v16 = vsel %vm325_vm7, %v324_v11, %v323_v7  ;;  %v330_v18 = vmul.f32 %v324_v11, %v314_v15  ;;  %v364_v21 = vrot.slane %v363_v17, 4  ;;  %v675_v60 = vpop.permute.xlu2 %674 }
  0x98   :  { %v329_v20 = vmul.f32 %v326_v16, %v1318_v10 }
  0x99   :  { %v139_v48 = vld.sshfl [vmem:[#allocation1] sm:$0xff pattern:$0x75316420]  ;;  %v140_v49 = vld.sshfl [vmem:[#allocation1 + $0x8] sm:$0xff pattern:$0x75316420]  ;;  %v366_v27 = vsel %vm365_vm8, %v364_v21, %v363_v17  ;;  %v370_v30 = vmul.f32 %v364_v21, %v354_v26 }
  0x9a   :  { %v141_v50 = vld.sshfl [vmem:[#allocation1 + $0x10] sm:$0xff pattern:$0x75316420]  ;;  %176 = vst [vmem:[#allocation1 + $0x1] ss:$2 sm:$0xff] %v171_v46  ;;  %144 = vrot.lane.b32.xlu2 %v140_v49, %s1190_s8  ;;  %142 = vrot.lane.b32.xlu1 %v139_v48, %s1190_s8  ;;  %v369_v31 = vmul.f32 %v366_v27, %v1318_v10  ;;  %v547_v10 = vmul.f32 %v545_v37, %v1371_v36 }
  0x9b   :  { %178 = vst [vmem:[#allocation1 + $0x11] ss:$2 sm:$0xff] %v172_v45  ;;  %146 = vrot.lane.b32.xlu0 %v141_v50, %s1190_s8  ;;  %v594_v46 = vld [vmem:[#allocation3 + $0x14] sm:$0xf]  ;;  %v570_v49 = vmul.f32 %v567_v47, %v1371_v36 }
  0x9c   :  { %v602_v41 = vpop.permute.xlu0 %601 }
  0x9d   :  { %v603_v45 = vrot.slane %v602_v41, 4 }
  0x9e   :  { %v638_v50 = vpop.permute.xlu1 %637 }
  0x9f   :  { %v608_v48 = vmul.f32 %v603_v45, %v594_v46  ;;  %v784_v16 = vpop.permute.xlu2 %783 }
  0xa0   :  { %v785_v32 = vrot.slane %v784_v16, 4 }
  0xa1   :  { %v180_v57 = vld.sshfl [vmem:[#allocation1 + $0x8] sm:$0xff pattern:$0x75316420]  ;;  %v179_v58 = vld.sshfl [vmem:[#allocation1] sm:$0xff pattern:$0x75316420] }
  0xa2   :  { %v181_v59 = vld.sshfl [vmem:[#allocation1 + $0x10] sm:$0xff pattern:$0x75316420]  ;;  %184 = vrot.lane.b32.xlu2 %v180_v57, %s1191_s9  ;;  %182 = vrot.lane.b32.xlu1 %v179_v58, %s1191_s9  ;;  %215 = vst [vmem:[#allocation1] ss:$2 sm:$0xff] %v211_v55  ;;  %v604_v57 = vsel %vm128_vm2, %v603_v45, %v602_v41 }
  0xa3   :  { %217 = vst [vmem:[#allocation1 + $0x10] ss:$2 sm:$0xff] %v212_v54  ;;  %186 = vrot.lane.b32.xlu0 %v181_v59, %s1191_s9  ;;  %v639_v54 = vrot.slane %v638_v50, 4  ;;  %v607_v59 = vmul.f32 %v604_v57, %v1371_v36  ;;  %v813_v41 = vld [vmem:[#allocation3 + $0x14] sm:$0xf] }
  0xa4   :  { %v711_v55 = vpop.permute.xlu0 %710 }
  0xa5   :  { %v644_v58 = vmul.f32 %v639_v54, %v630_v56 }
  0xa6   :  { %v748_v19 = vpop.permute.xlu1 %747 }
  0xa9   :  { %v219_v2 = vld.sshfl [vmem:[#allocation1 + $0x8] sm:$0xff pattern:$0x75316420]  ;;  %v218_v3 = vld.sshfl [vmem:[#allocation1] sm:$0xff pattern:$0x75316420] }
  0xaa   :  { %v220_v4 = vld.sshfl [vmem:[#allocation1 + $0x10] sm:$0xff pattern:$0x75316420]  ;;  %223 = vrot.lane.b32.xlu2 %v219_v2, %s1192_s10  ;;  %221 = vrot.lane.b32.xlu1 %v218_v3, %s1192_s10  ;;  %255 = vst [vmem:[#allocation1 + $0x1] ss:$2 sm:$0xff] %v250_v0  ;;  %v676_v0 = vrot.slane %v675_v60, 4 }
  0xab   :  { %257 = vst [vmem:[#allocation1 + $0x11] ss:$2 sm:$0xff] %v251_v63  ;;  %225 = vrot.lane.b32.xlu0 %v220_v4, %s1192_s10  ;;  %v667_v2 = vld [vmem:[#allocation3 + $0x14] sm:$0xf]  ;;  %v640_v4 = vsel %vm167_vm3, %v639_v54, %v638_v50  ;;  %vm430_vm3 = vcmask 293888  }
  0xac   :  { %v821_v1 = vpop.permute.xlu0 %820  ;;  %v681_v6 = vmul.f32 %v676_v0, %v667_v2  ;;  %v677_v15 = vsel %vm207_vm4, %v676_v0, %v675_v60  ;;  %vm1008_vm4 = vcmask 523264  }
  0xad   :  { %v822_v3 = vrot.slane %v821_v1, 4 }
  0xaf   :  { %v823_v5 = vsel %vm365_vm8, %v822_v3, %v821_v1 }
  0xb0   :  { %v1397_v7 = vmul.f32 %v823_v5, %v1371_v36 }
  0xb1   :  { %v259_v12 = vld.sshfl [vmem:[#allocation1 + $0x8] sm:$0xff pattern:$0x75316420]  ;;  %v258_v13 = vld.sshfl [vmem:[#allocation1] sm:$0xff pattern:$0x75316420] }
  0xb2   :  { %v260_v14 = vld.sshfl [vmem:[#allocation1 + $0x10] sm:$0xff pattern:$0x75316420]  ;;  %263 = vrot.lane.b32.xlu2 %v259_v12, %s1193_s11  ;;  %261 = vrot.lane.b32.xlu1 %v258_v13, %s1193_s11  ;;  %294 = vst [vmem:[#allocation1] ss:$2 sm:$0xff] %v290_v9  ;;  %v712_v13 = vrot.slane %v711_v55, 4 }
  0xb3   :  { %265 = vrot.lane.b32.xlu0 %v260_v14, %s1193_s11  ;;  %296 = vst [vmem:[#allocation1 + $0x10] ss:$2 sm:$0xff] %v291_v8  ;;  %v643_v8 = vmul.f32 %v640_v4, %v1371_v36  ;;  %v703_v14 = vld [vmem:[#allocation3 + $0x14] sm:$0xf] }
  0xb4   :  { %v717_v17 = vmul.f32 %v712_v13, %v703_v14  ;;  %v713_v25 = vsel %vm246_vm5, %v712_v13, %v711_v55 }
  0xb5   :  { %v716_v27 = vmul.f32 %v713_v25, %v1371_v36 }
  0xb9   :  { %v298_v22 = vld.sshfl [vmem:[#allocation1 + $0x8] sm:$0xff pattern:$0x75316420]  ;;  %v297_v23 = vld.sshfl [vmem:[#allocation1] sm:$0xff pattern:$0x75316420] }
  0xba   :  { %v299_v24 = vld.sshfl [vmem:[#allocation1 + $0x10] sm:$0xff pattern:$0x75316420]  ;;  %302 = vrot.lane.b32.xlu2 %v298_v22, %s1194_s14  ;;  %300 = vrot.lane.b32.xlu1 %v297_v23, %s1194_s14  ;;  %334 = vst [vmem:[#allocation1 + $0x1] ss:$2 sm:$0xff] %v329_v20  ;;  %v749_v23 = vrot.slane %v748_v19, 4 }
  0xbb   :  { %304 = vrot.lane.b32.xlu0 %v299_v24, %s1194_s14  ;;  %336 = vst [vmem:[#allocation1 + $0x11] ss:$2 sm:$0xff] %v330_v18  ;;  %v680_v18 = vmul.f32 %v677_v15, %v1371_v36  ;;  %v740_v24 = vld [vmem:[#allocation3 + $0x14] sm:$0xf] }
  0xbc   :  { %v754_v26 = vmul.f32 %v749_v23, %v740_v24 }
  0xc1   :  { %v338_v33 = vld.sshfl [vmem:[#allocation1 + $0x8] sm:$0xff pattern:$0x75316420]  ;;  %v337_v34 = vld.sshfl [vmem:[#allocation1] sm:$0xff pattern:$0x75316420] }
  0xc2   :  { %v339_v35 = vld.sshfl [vmem:[#allocation1 + $0x10] sm:$0xff pattern:$0x75316420]  ;;  %342 = vrot.lane.b32.xlu2 %v338_v33, %s1195_s1  ;;  %340 = vrot.lane.b32.xlu1 %v337_v34, %s1195_s1  ;;  %373 = vst [vmem:[#allocation1] ss:$2 sm:$0xff] %v369_v31  ;;  %v750_v34 = vsel %vm286_vm6, %v749_v23, %v748_v19 }
  0xc3   :  { %344 = vrot.lane.b32.xlu0 %v339_v35, %s1195_s1  ;;  %375 = vst [vmem:[#allocation1 + $0x10] ss:$2 sm:$0xff] %v370_v30  ;;  %v776_v33 = vld [vmem:[#allocation3 + $0x14] sm:$0xf]  ;;  %v753_v37 = vmul.f32 %v750_v34, %v1371_v36 }
  0xc4   :  { %v790_v35 = vmul.f32 %v785_v32, %v776_v33 }
  0xc9   :  { %v377_v42 = vld.sshfl [vmem:[#allocation1 + $0x8] sm:$0xff pattern:$0x75316420]  ;;  %v376_v43 = vld.sshfl [vmem:[#allocation1] sm:$0xff pattern:$0x75316420] }
  0xca   :  { %v378_v44 = vld.sshfl [vmem:[#allocation1 + $0x10] sm:$0xff pattern:$0x75316420]  ;;  %381 = vrot.lane.b32.xlu2 %v377_v42, %s1196_s0  ;;  %379 = vrot.lane.b32.xlu1 %v376_v43, %s1196_s0  ;;  %549 = vst [vmem:[#allocation1] ss:$2 sm:$0xff] %v547_v10  ;;  %v786_v42 = vsel %vm325_vm7, %v785_v32, %v784_v16  ;;  %v827_v43 = vmul.f32 %v822_v3, %v813_v41 }
  0xcb   :  { %383 = vrot.lane.b32.xlu0 %v378_v44, %s1196_s0  ;;  %577 = vst [vmem:[#allocation1 + $0x11] ss:$2 sm:$0xff] %v571_v40  ;;  %v789_v44 = vmul.f32 %v786_v42, %v1371_v36 }
  0xd1   :  { %v1381_v51 = vld.sshfl [vmem:[#allocation1] sm:$0xff pattern:$0x75316420]  ;;  %v1383_v52 = vld.sshfl [vmem:[#allocation1 + $0x8] sm:$0xff pattern:$0x75316420] }
  0xd2   :  { %575 = vst [vmem:[#allocation1 + $0x1] ss:$2 sm:$0xff] %v570_v49  ;;  %v1385_v53 = vld.sshfl [vmem:[#allocation1 + $0x10] sm:$0xff pattern:$0x75316420] }
  0xd3   :  { %613 = vst [vmem:[#allocation1 + $0x10] ss:$2 sm:$0xff] %v608_v48 }
  0xd9   :  { %v1389_v61 = vld.sshfl [vmem:[#allocation1] sm:$0xff pattern:$0x75316420]  ;;  %v1391_v62 = vld.sshfl [vmem:[#allocation1 + $0x8] sm:$0xff pattern:$0x75316420] }
  0xda   :  { %611 = vst [vmem:[#allocation1] ss:$2 sm:$0xff] %v607_v59  ;;  %v616_v63 = vld.sshfl [vmem:[#allocation1 + $0x10] sm:$0xff pattern:$0x75316420] }
  0xdb   :  { %621 = vrot.lane.b32.xlu0 %v616_v63, %s1190_s8  ;;  %650 = vst [vmem:[#allocation1 + $0x11] ss:$2 sm:$0xff] %v644_v58 }
  0xe1   :  { %v615_v9 = vld.sshfl [vmem:[#allocation1 + $0x8] sm:$0xff pattern:$0x75316420]  ;;  %v614_v11 = vld.sshfl [vmem:[#allocation1] sm:$0xff pattern:$0x75316420] }
  0xe2   :  { %v653_v12 = vld.sshfl [vmem:[#allocation1 + $0x10] sm:$0xff pattern:$0x75316420]  ;;  %619 = vrot.lane.b32.xlu2 %v615_v9, %s1190_s8  ;;  %617 = vrot.lane.b32.xlu1 %v614_v11, %s1190_s8  ;;  %648 = vst [vmem:[#allocation1 + $0x1] ss:$2 sm:$0xff] %v643_v8 }
  0xe3   :  { %658 = vrot.lane.b32.xlu0 %v653_v12, %s1191_s9  ;;  %686 = vst [vmem:[#allocation1 + $0x10] ss:$2 sm:$0xff] %v681_v6 }
  0xe9   :  { %v652_v20 = vld.sshfl [vmem:[#allocation1 + $0x8] sm:$0xff pattern:$0x75316420]  ;;  %v651_v21 = vld.sshfl [vmem:[#allocation1] sm:$0xff pattern:$0x75316420] }
  0xea   :  { %v689_v22 = vld.sshfl [vmem:[#allocation1 + $0x10] sm:$0xff pattern:$0x75316420]  ;;  %656 = vrot.lane.b32.xlu2 %v652_v20, %s1191_s9  ;;  %654 = vrot.lane.b32.xlu1 %v651_v21, %s1191_s9  ;;  %684 = vst [vmem:[#allocation1] ss:$2 sm:$0xff] %v680_v18 }
  0xeb   :  { %694 = vrot.lane.b32.xlu0 %v689_v22, %s1192_s10  ;;  %723 = vst [vmem:[#allocation1 + $0x11] ss:$2 sm:$0xff] %v717_v17 }
  0xec   :  { %v106_v28 = vpop.permute.xlu2 %105 }
  0xf1   :  { %v688_v29 = vld.sshfl [vmem:[#allocation1 + $0x8] sm:$0xff pattern:$0x75316420]  ;;  %v687_v30 = vld.sshfl [vmem:[#allocation1] sm:$0xff pattern:$0x75316420] }
  0xf2   :  { %v726_v31 = vld.sshfl [vmem:[#allocation1 + $0x10] sm:$0xff pattern:$0x75316420]  ;;  %692 = vrot.lane.b32.xlu2 %v688_v29, %s1192_s10  ;;  %690 = vrot.lane.b32.xlu1 %v687_v30, %s1192_s10  ;;  %721 = vst [vmem:[#allocation1 + $0x1] ss:$2 sm:$0xff] %v716_v27 }
  0xf3   :  { %731 = vrot.lane.b32.xlu0 %v726_v31, %s1193_s11  ;;  %759 = vst [vmem:[#allocation1 + $0x10] ss:$2 sm:$0xff] %v754_v26 }
  0xf4   :  { %v145_v40 = vpop.permute.xlu2 %144 }
  0xf9   :  { %v725_v38 = vld.sshfl [vmem:[#allocation1 + $0x8] sm:$0xff pattern:$0x75316420]  ;;  %v724_v39 = vld.sshfl [vmem:[#allocation1] sm:$0xff pattern:$0x75316420] }
  0xfa   :  { %v762_v10 = vld.sshfl [vmem:[#allocation1 + $0x10] sm:$0xff pattern:$0x75316420]  ;;  %729 = vrot.lane.b32.xlu2 %v725_v38, %s1193_s11  ;;  %727 = vrot.lane.b32.xlu1 %v724_v39, %s1193_s11  ;;  %757 = vst [vmem:[#allocation1] ss:$2 sm:$0xff] %v753_v37 }
  0xfb   :  { %767 = vrot.lane.b32.xlu0 %v762_v10, %s1194_s14  ;;  %796 = vst [vmem:[#allocation1 + $0x11] ss:$2 sm:$0xff] %v790_v35 }
  0xfc   :  { %v185_v54 = vpop.permute.xlu2 %184 }
 0x101   :  { %v761_v45 = vld.sshfl [vmem:[#allocation1 + $0x8] sm:$0xff pattern:$0x75316420]  ;;  %v760_v46 = vld.sshfl [vmem:[#allocation1] sm:$0xff pattern:$0x75316420] }
 0x102   :  { %v799_v47 = vld.sshfl [vmem:[#allocation1 + $0x10] sm:$0xff pattern:$0x75316420]  ;;  %765 = vrot.lane.b32.xlu2 %v761_v45, %s1194_s14  ;;  %763 = vrot.lane.b32.xlu1 %v760_v46, %s1194_s14  ;;  %794 = vst [vmem:[#allocation1 + $0x1] ss:$2 sm:$0xff] %v789_v44 }
 0x103   :  { %804 = vrot.lane.b32.xlu0 %v799_v47, %s1195_s1  ;;  %832 = vst [vmem:[#allocation1 + $0x10] ss:$2 sm:$0xff] %v827_v43  ;;  %v108_v48 = vpop.permute.xlu0 %107 }
 0x104   :  { %v111_v49 = vsel %vm109_vm9, %v106_v28, %v108_v48  ;;  %v104_v50 = vpop.permute.xlu1 %103  ;;  %v224_v2 = vpop.permute.xlu2 %223 }
 0x105   :  { %115 = vst [vmem:[#allocation2] sm:$0xf0] %v111_v49  ;;  %v110_v36 = vsel %vm109_vm9, %v104_v50, %v106_v28 }
 0x106   :  { %114 = vst [vmem:[#allocation2 + $0x30] sm:$0xf0] %v110_v36 }
 0x109   :  { %v798_v55 = vld.sshfl [vmem:[#allocation1 + $0x8] sm:$0xff pattern:$0x75316420]  ;;  %v797_v56 = vld.sshfl [vmem:[#allocation1] sm:$0xff pattern:$0x75316420] }
 0x10a   :  { %v835_v57 = vld.sshfl [vmem:[#allocation1 + $0x10] sm:$0xff pattern:$0x75316420]  ;;  %802 = vrot.lane.b32.xlu2 %v798_v55, %s1195_s1  ;;  %800 = vrot.lane.b32.xlu1 %v797_v56, %s1195_s1  ;;  %830 = vst [vmem:[#allocation1] ss:$2 sm:$0xff] %v1397_v7 }
 0x10b   :  { %840 = vrot.lane.b32.xlu0 %v835_v57, %s1196_s0 }
 0x10c   :  { %v143_v58 = vpop.permute.xlu1 %142  ;;  %v1429_v59 = vld [vmem:[#allocation2] sm:$0xff]  ;;  %v264_v8 = vpop.permute.xlu2 %263 }
 0x10d   :  { %v147_v60 = vpop.permute.xlu0 %146  ;;  %v149_v63 = vsel %vm148_vm10, %v143_v58, %v145_v40  ;;  %555 = vst [vmem:[#allocation2] sm:$0xf] %v1383_v52  ;;  %v1433_v0 = vld [vmem:[#allocation2 + $0x30] sm:$0xff]  ;;  %v1480_v58 = vld [vmem:[%s1571_s2 + $0x8] sm:$0xff] }
 0x10e   :  { %v150_v1 = vsel %vm148_vm10, %v145_v40, %v147_v60  ;;  %153 = vst [vmem:[#allocation2 + $0x18] sm:$0xf] %v149_v63 }
 0x10f   :  { %154 = vst [vmem:[#allocation2 + $0x10] sm:$0xf] %v150_v1 }
 0x110   :  { %554 = vst [vmem:[#allocation2 + $0x30] sm:$0xf] %v1381_v51 }
 0x111   :  { %v834_v3 = vld.sshfl [vmem:[#allocation1 + $0x8] sm:$0xff pattern:$0x75316420]  ;;  %v833_v4 = vld.sshfl [vmem:[#allocation1] sm:$0xff pattern:$0x75316420] }
 0x112   :  { %838 = vrot.lane.b32.xlu2 %v834_v3, %s1196_s0  ;;  %836 = vrot.lane.b32.xlu1 %v833_v4, %s1196_s0 }
 0x113   :  { %585 = vrot.lane.b32.xlu0 %v1385_v53, %s1189_s30 }
 0x114   :  { %v183_v52 = vpop.permute.xlu1 %182  ;;  %v303_v12 = vpop.permute.xlu2 %302 }
 0x115   :  { %v187_v5 = vpop.permute.xlu0 %186  ;;  %v189_v6 = vsel %vm188_vm11, %v183_v52, %v185_v54  ;;  %v1500_v52 = vld [vmem:[%s1571_s2 + $0x18] sm:$0xff] }
 0x116   :  { %v190_v7 = vsel %vm188_vm11, %v185_v54, %v187_v5  ;;  %193 = vst [vmem:[#allocation2 + $0x18] sm:$0xf0] %v189_v6  ;;  %v1469_v54 = vld [vmem:[%s1571_s2] sm:$0xff] }
 0x117   :  { %194 = vst [vmem:[#allocation2 + $0x10] sm:$0xf0] %v190_v7 }
 0x11a   :  { %583 = vrot.lane.b32.xlu2 %v1391_v62, %s1189_s30  ;;  %581 = vrot.lane.b32.xlu1 %v1389_v61, %s1189_s30 }
 0x11c   :  { %v222_v51 = vpop.permute.xlu1 %221  ;;  %v343_v16 = vpop.permute.xlu2 %342 }
 0x11d   :  { %v226_v9 = vpop.permute.xlu0 %225  ;;  %v228_v53 = vsel %vm227_vm12, %v222_v51, %v224_v2  ;;  %v398_v38 = vld [vmem:[#allocation2 + $0x18] sm:$0xff] }
 0x11e   :  { %v229_v11 = vsel %vm227_vm12, %v224_v2, %v226_v9  ;;  %232 = vst [vmem:[#allocation2 + $0x48] sm:$0xf] %v228_v53  ;;  %v399_v39 = vld [vmem:[#allocation2 + $0x10] sm:$0xff]  ;;  %v1491_v2 = vld [vmem:[%s1571_s2 + $0x10] sm:$0xff] }
 0x11f   :  { %233 = vst [vmem:[#allocation2 + $0x28] sm:$0xf] %v229_v11 }
 0x124   :  { %v262_v13 = vpop.permute.xlu1 %261  ;;  %v382_v24 = vpop.permute.xlu2 %381 }
 0x125   :  { %v266_v14 = vpop.permute.xlu0 %265  ;;  %v268_v15 = vsel %vm267_vm13, %v262_v13, %v264_v8  ;;  %v409_v13 = vld [vmem:[%s1572_s3 + $0x18] sm:$0xff] }
 0x126   :  { %v269_v62 = vsel %vm267_vm13, %v264_v8, %v266_v14  ;;  %272 = vst [vmem:[#allocation2 + $0x48] sm:$0xf0] %v268_v15  ;;  %v1197_v14 = vmov 0  }
 0x127   :  { %273 = vst [vmem:[#allocation2 + $0x28] sm:$0xf0] %v269_v62  ;;  %1118 = vset.pattern.permute.xlu0 %v1197_v14  ;;  %1116 = vset.pattern.permute.xlu1 %v1197_v14 }
 0x128   :  { %427 = vperm.xlu1 %1116, %v409_v13   ;;  %1117 = vset.pattern.permute.xlu2 %v1197_v14 }
 0x129   :  { %883 = vperm.xlu2 %1117, %v409_v13  }
 0x12c   :  { %v301_v61 = vpop.permute.xlu1 %300 }
 0x12d   :  { %v305_v17 = vpop.permute.xlu0 %304  ;;  %v307_v18 = vsel %vm306_vm14, %v301_v61, %v303_v12  ;;  %v400_v35 = vld [vmem:[#allocation2 + $0x48] sm:$0xff] }
 0x12e   :  { %v308_v19 = vsel %vm306_vm14, %v303_v12, %v305_v17  ;;  %311 = vst [vmem:[#allocation2 + $0x8] sm:$0xf] %v307_v18  ;;  %v401_v37 = vld [vmem:[#allocation2 + $0x28] sm:$0xff] }
 0x12f   :  { %312 = vst [vmem:[#allocation2 + $0x20] sm:$0xf] %v308_v19  ;;  %v408_v12 = vld [vmem:[%s1572_s3 + $0x10] sm:$0xff] }
 0x130   :  { %422 = vperm.xlu0 %1118, %v408_v12   ;;  %878 = vperm.xlu1 %1116, %v408_v12  }
 0x134   :  { %v341_v20 = vpop.permute.xlu1 %340 }
 0x135   :  { %v345_v21 = vpop.permute.xlu0 %344  ;;  %v347_v22 = vsel %vm346_vm15, %v341_v20, %v343_v16  ;;  %v862_v20 = vld [vmem:[%s1572_s3] sm:$0xff] }
 0x136   :  { %v348_v23 = vsel %vm346_vm15, %v343_v16, %v345_v21  ;;  %351 = vst [vmem:[#allocation2 + $0x8] sm:$0xf0] %v347_v22 }
 0x137   :  { %352 = vst [vmem:[#allocation2 + $0x20] sm:$0xf0] %v348_v23 }
 0x138   :  { %868 = vperm.xlu0 %1118, %v862_v20  }
 0x13c   :  { %v380_v25 = vpop.permute.xlu1 %379  ;;  %v620_v29 = vpop.permute.xlu2 %619 }
 0x13d   :  { %v384_v26 = vpop.permute.xlu0 %383  ;;  %v386_v27 = vsel %vm385_vm1, %v380_v25, %v382_v24  ;;  %v402_v32 = vld [vmem:[#allocation2 + $0x8] sm:$0xff] }
 0x13e   :  { %v387_v28 = vsel %vm385_vm1, %v382_v24, %v384_v26  ;;  %390 = vst [vmem:[#allocation2 + $0x40] sm:$0xf] %v386_v27  ;;  %v403_v33 = vld [vmem:[#allocation2 + $0x20] sm:$0xff] }
 0x13f   :  { %391 = vst [vmem:[#allocation2 + $0x38] sm:$0xf] %v387_v28  ;;  %v407_v28 = vld [vmem:[%s1572_s3 + $0x8] sm:$0xff] }
 0x140   :  { %417 = vperm.xlu2 %1117, %v407_v28   ;;  %873 = vperm.xlu1 %1116, %v407_v28  }
 0x144   :  { %v657_v34 = vpop.permute.xlu2 %656 }
 0x145   :  { %v404_v30 = vld [vmem:[#allocation2 + $0x40] sm:$0xf] }
 0x146   :  { %v405_v31 = vld [vmem:[#allocation2 + $0x38] sm:$0xf]  ;;  %1054 = vmatpush.msk.msra.mxu0 %vm64_vm0, %v404_v30 }
 0x147   :  { %1059 = vmatpush.msk.msra.mxu1 %vm64_vm0, %v405_v31 }
 0x148   :  { %461 = vmatpush.msra.mxu0 %v402_v32  ;;  %412 = vperm.xlu2 %1117, %v862_v20  }
 0x149   :  { %490 = vmatpush.msra.mxu1 %v403_v33 }
 0x14a   :  { %462 = vmatpush.msra.mxu0 %v400_v35 }
 0x14b   :  { %491 = vmatpush.msra.mxu1 %v401_v37 }
 0x14c   :  { %463 = vmatpush.msra.mxu0 %v398_v38  ;;  %v693_v41 = vpop.permute.xlu2 %692 }
 0x14d   :  { %v622_v10 = vpop.permute.xlu0 %621  ;;  %492 = vmatpush.msra.mxu1 %v399_v39 }
 0x14e   :  { %v624_v40 = vsel %vm148_vm10, %v620_v29, %v622_v10  ;;  %464 = vmatpush.msra.mxu0 %v1433_v0 }
 0x14f   :  { %628 = vst [vmem:[#allocation2 + $0x10] sm:$0xf] %v624_v40  ;;  %493 = vmatpush.msra.mxu1 %v1429_v59  ;;  %1055 = vmatmul.msk.f32.vlgmr.msra.gmra.mxu0 %vm430_vm3, %v1469_v54 }
 0x150   :  { %1060 = vmatmul.msk.f32.vlgmr.msra.gmra.mxu1 %vm430_vm3, %v1469_v54 }
 0x154   :  { %v618_v42 = vpop.permute.xlu1 %617  ;;  %v730_v47 = vpop.permute.xlu2 %729 }
 0x155   :  { %v659_v43 = vpop.permute.xlu0 %658  ;;  %v623_v44 = vsel %vm148_vm10, %v618_v42, %v620_v29 }
 0x156   :  { %v661_v45 = vsel %vm188_vm11, %v657_v34, %v659_v43  ;;  %627 = vst [vmem:[#allocation2 + $0x18] sm:$0xf] %v623_v44 }
 0x157   :  { %665 = vst [vmem:[#allocation2 + $0x10] sm:$0xf0] %v661_v45  ;;  %1056 = vmatmul.msk.f32.gmra.mxu0 %vm430_vm3, %v1480_v58 }
 0x158   :  { %1061 = vmatmul.msk.f32.gmra.mxu1 %vm430_vm3, %v1480_v58 }
 0x15c   :  { %v655_v46 = vpop.permute.xlu1 %654  ;;  %v766_v59 = vpop.permute.xlu2 %765 }
 0x15d   :  { %v695_v48 = vpop.permute.xlu0 %694  ;;  %v660_v49 = vsel %vm188_vm11, %v655_v46, %v657_v34 }
 0x15e   :  { %v697_v50 = vsel %vm227_vm12, %v693_v41, %v695_v48  ;;  %664 = vst [vmem:[#allocation2 + $0x18] sm:$0xf0] %v660_v49  ;;  %v855_v22 = vld [vmem:[#allocation2 + $0x10] sm:$0xff] }
 0x15f   :  { %701 = vst [vmem:[#allocation2 + $0x28] sm:$0xf] %v697_v50  ;;  %1057 = vmatmul.msk.f32.gmra.mxu0 %vm430_vm3, %v1491_v2 }
 0x160   :  { %1062 = vmatmul.msk.f32.gmra.mxu1 %vm430_vm3, %v1491_v2 }
 0x164   :  { %v691_v36 = vpop.permute.xlu1 %690  ;;  %v803_v3 = vpop.permute.xlu2 %802 }
 0x165   :  { %v732_v55 = vpop.permute.xlu0 %731  ;;  %v696_v56 = vsel %vm227_vm12, %v691_v36, %v693_v41  ;;  %v854_v30 = vld [vmem:[#allocation2 + $0x18] sm:$0xff] }
 0x166   :  { %v734_v57 = vsel %vm267_vm13, %v730_v47, %v732_v55  ;;  %700 = vst [vmem:[#allocation2 + $0x48] sm:$0xf] %v696_v56 }
 0x167   :  { %738 = vst [vmem:[#allocation2 + $0x28] sm:$0xf0] %v734_v57  ;;  %1058 = vmatmul.msk.f32.gmra.mxu0 %vm430_vm3, %v1500_v52 }
 0x168   :  { %1063 = vmatmul.msk.f32.gmra.mxu1 %vm430_vm3, %v1500_v52 }
 0x16c   :  { %v728_v60 = vpop.permute.xlu1 %727  ;;  %v839_v8 = vpop.permute.xlu2 %838 }
 0x16d   :  { %v768_v63 = vpop.permute.xlu0 %767  ;;  %v733_v0 = vsel %vm267_vm13, %v728_v60, %v730_v47 }
 0x16e   :  { %v770_v1 = vsel %vm306_vm14, %v766_v59, %v768_v63  ;;  %737 = vst [vmem:[#allocation2 + $0x48] sm:$0xf0] %v733_v0  ;;  %v857_v21 = vld [vmem:[#allocation2 + $0x28] sm:$0xff] }
 0x16f   :  { %774 = vst [vmem:[#allocation2 + $0x20] sm:$0xf] %v770_v1 }
 0x174   :  { %v764_v4 = vpop.permute.xlu1 %763  ;;  %v584_v62 = vpop.permute.xlu2 %583 }
 0x175   :  { %v805_v5 = vpop.permute.xlu0 %804  ;;  %v769_v6 = vsel %vm306_vm14, %v764_v4, %v766_v59  ;;  %v856_v29 = vld [vmem:[#allocation2 + $0x48] sm:$0xff] }
 0x176   :  { %v807_v7 = vsel %vm346_vm15, %v803_v3, %v805_v5  ;;  %773 = vst [vmem:[#allocation2 + $0x8] sm:$0xf] %v769_v6 }
 0x177   :  { %811 = vst [vmem:[#allocation2 + $0x20] sm:$0xf0] %v807_v7 }
 0x17c   :  { %v801_v51 = vpop.permute.xlu1 %800 }
 0x17d   :  { %v841_v9 = vpop.permute.xlu0 %840  ;;  %v806_v53 = vsel %vm346_vm15, %v801_v51, %v803_v3 }
 0x17e   :  { %v843_v11 = vsel %vm385_vm1, %v839_v8, %v841_v9  ;;  %810 = vst [vmem:[#allocation2 + $0x8] sm:$0xf0] %v806_v53  ;;  %v859_v19 = vld [vmem:[#allocation2 + $0x20] sm:$0xff] }
 0x17f   :  { %847 = vst [vmem:[#allocation2 + $0x38] sm:$0xf] %v843_v11 }
 0x183   :  { %v884_v34 = vpop.permute.xlu2 %883 }
 0x184   :  { %v837_v15 = vpop.permute.xlu1 %836 }
 0x185   :  { %v586_v61 = vpop.permute.xlu0 %585  ;;  %v842_v16 = vsel %vm385_vm1, %v837_v15, %v839_v8  ;;  %v858_v27 = vld [vmem:[#allocation2 + $0x8] sm:$0xff] }
 0x186   :  { %v588_v17 = vsel %vm109_vm9, %v584_v62, %v586_v61  ;;  %846 = vst [vmem:[#allocation2 + $0x40] sm:$0xf] %v842_v16  ;;  %v861_v18 = vld [vmem:[#allocation2 + $0x38] sm:$0xf] }
 0x187   :  { %592 = vst [vmem:[#allocation2] sm:$0xf0] %v588_v17  ;;  %1077 = vmatpush.msk.msra.mxu3 %vm64_vm0, %v861_v18 }
 0x189   :  { %945 = vmatpush.msra.mxu3 %v859_v19 }
 0x18b   :  { %946 = vmatpush.msra.mxu3 %v857_v21 }
 0x18c   :  { %v582_v23 = vpop.permute.xlu1 %581 }
 0x18d   :  { %947 = vmatpush.msra.mxu3 %v855_v22  ;;  %v587_v24 = vsel %vm109_vm9, %v582_v23, %v584_v62  ;;  %v860_v25 = vld [vmem:[#allocation2 + $0x40] sm:$0xf] }
 0x18e   :  { %591 = vst [vmem:[#allocation2 + $0x30] sm:$0xf0] %v587_v24  ;;  %v853_v26 = vld [vmem:[#allocation2] sm:$0xff]  ;;  %1072 = vmatpush.msk.msra.mxu2 %vm64_vm0, %v860_v25 }
 0x18f   :  { %948 = vmatpush.msra.mxu3 %v853_v26 }
 0x190   :  { %1078 = vmatmul.msk.f32.vlgmr.msra.gmra.mxu3 %vm430_vm3, %v1469_v54  ;;  %916 = vmatpush.msra.mxu2 %v858_v27 }
 0x192   :  { %917 = vmatpush.msra.mxu2 %v856_v29 }
 0x194   :  { %918 = vmatpush.msra.mxu2 %v854_v30 }
 0x195   :  { %v852_v31 = vld [vmem:[#allocation2 + $0x30] sm:$0xff] }
 0x196   :  { %919 = vmatpush.msra.mxu2 %v852_v31 }
 0x197   :  { %1073 = vmatmul.msk.f32.vlgmr.msra.gmra.mxu2 %vm430_vm3, %v1469_v54 }
 0x198   :  { %1079 = vmatmul.msk.f32.gmra.mxu3 %vm430_vm3, %v1480_v58 }
 0x19a   :  { %v418_v38 = vpop.permute.xlu2 %417  ;;  %v428_v49 = vpop.permute.xlu1 %427 }
 0x19f   :  { %1074 = vmatmul.msk.f32.gmra.mxu2 %vm430_vm3, %v1480_v58 }
 0x1a0   :  { %1080 = vmatmul.msk.f32.gmra.mxu3 %vm430_vm3, %v1491_v2 }
 0x1a2   :  { %v423_v45 = vpop.permute.xlu0 %422  ;;  %v413_v63 = vpop.permute.xlu2 %412 }
 0x1a3   :  { %v879_v14 = vpop.permute.xlu1 %878 }
 0x1a7   :  { %1075 = vmatmul.msk.f32.gmra.mxu2 %vm430_vm3, %v1491_v2 }
 0x1a8   :  { %1081 = vmatmul.msk.f32.gmra.mxu3 %vm430_vm3, %v1500_v52 }
 0x1aa   :  { %v869_v5 = vpop.permute.xlu0 %868 }
 0x1af   :  { %1076 = vmatmul.msk.f32.gmra.mxu2 %vm430_vm3, %v1500_v52 }
 0x1b2   :  { %v874_v23 = vpop.permute.xlu1 %873 }
 0x1cc   :  { %v466_v32 = vpop.f32.mrf.mxu0 }
 0x1cd   :  { %v495_v33 = vpop.f32.mrf.mxu1  ;;  %v467_v0 = vadd.f32 %v466_v32, %v413_v63  ;;  %v1198_v32 = vmov 256.0  }
 0x1ce   :  { %v496_v1 = vadd.f32 %v495_v33, %v413_v63  ;;  %1121 = vrcp.f32 %v1198_v32 }
 0x1cf   :  { %v507_v2 = vmax.f32 %v467_v0, 0.0 }
 0x1d0   :  { %v508_v3 = vmax.f32 %v496_v1, 0.0 }
 0x1d2   :  { %v515_v4 = vadd.f32 %v508_v3, %v507_v2 }
 0x1d4   :  { %v469_v37 = vpop.f32.mrf.mxu0  ;;  %v1122_v33 = vpop.eup %1121 }
 0x1d5   :  { %v498_v35 = vpop.f32.mrf.mxu1  ;;  %v470_v10 = vadd.f32 %v469_v37, %v418_v38  ;;  %vm532_vm0 = vweird.f32 %v1122_v33 }
 0x1d6   :  { %v499_v40 = vadd.f32 %v498_v35, %v418_v38  ;;  %v528_v35 = vmul.f32 256.0, %v1122_v33 }
 0x1d7   :  { %v509_v42 = vmax.f32 %v470_v10, 0.0 }
 0x1d8   :  { %v510_v43 = vmax.f32 %v499_v40, 0.0  ;;  %v529_v38 = vsub.f32 1.0, %v528_v35 }
 0x1da   :  { %v518_v44 = vadd.f32 %v510_v43, %v509_v42 }
 0x1dc   :  { %v472_v41 = vpop.f32.mrf.mxu0  ;;  %519 = vadd.xlane.f32.xlu1 %v518_v44 }
 0x1dd   :  { %v501_v39 = vpop.f32.mrf.mxu1  ;;  %v473_v47 = vadd.f32 %v472_v41, %v423_v45 }
 0x1de   :  { %v502_v48 = vadd.f32 %v501_v39, %v423_v45  ;;  %v530_v39 = vmul.f32 %v1122_v33, %v529_v38 }
 0x1df   :  { %v511_v55 = vmax.f32 %v473_v47, 0.0  ;;  %v1119_v47 = vld [vmem:[%s1575_s6] ss:$0 sm:$0xff] }
 0x1e0   :  { %v512_v56 = vmax.f32 %v502_v48, 0.0  ;;  %v1120_v48 = vld [vmem:[%s1575_s6 + $0x1] ss:$0 sm:$0xff] }
 0x1e2   :  { %v521_v59 = vadd.f32 %v512_v56, %v511_v55 }
 0x1e4   :  { %v475_v50 = vpop.f32.mrf.mxu0  ;;  %522 = vadd.xlane.f32.xlu0 %v521_v59 }
 0x1e5   :  { %v504_v46 = vpop.f32.mrf.mxu1  ;;  %v476_v36 = vadd.f32 %v475_v50, %v428_v49 }
 0x1e6   :  { %v505_v54 = vadd.f32 %v504_v46, %v428_v49 }
 0x1e7   :  { %v513_v58 = vmax.f32 %v476_v36, 0.0 }
 0x1e8   :  { %v514_v57 = vmax.f32 %v505_v54, 0.0 }
 0x1ea   :  { %v524_v60 = vadd.f32 %v514_v57, %v513_v58 }
 0x1ec   :  { %525 = vadd.xlane.f32.xlu1 %v524_v60  ;;  %516 = vadd.xlane.f32.xlu0 %v515_v4 }
 0x213   :  { %v950_v52 = vpop.f32.mrf.mxu3 }
 0x214   :  { %v951_v6 = vadd.f32 %v950_v52, %v869_v5 }
 0x216   :  { %v963_v51 = vmax.f32 %v951_v6, 0.0 }
 0x21a   :  { %v921_v7 = vpop.f32.mrf.mxu2 }
 0x21b   :  { %v953_v8 = vpop.f32.mrf.mxu3  ;;  %v922_v9 = vadd.f32 %v921_v7, %v869_v5 }
 0x21c   :  { %v954_v26 = vadd.f32 %v953_v8, %v874_v23  ;;  %v1005_v8 = vld [vmem:[%s1573_s4 + $0x18] sm:$0xff] }
 0x21d   :  { %v962_v53 = vmax.f32 %v922_v9, 0.0  ;;  %v1003_v9 = vld [vmem:[%s1573_s4 + $0x8] sm:$0xff] }
 0x21e   :  { %v965_v29 = vmax.f32 %v954_v26, 0.0 }
 0x21f   :  { %v970_v11 = vadd.f32 %v963_v51, %v962_v53  ;;  %v1004_v51 = vld [vmem:[%s1573_s4 + $0x10] sm:$0xff]  ;;  %v1002_v53 = vld [vmem:[%s1573_s4] sm:$0xff] }
 0x221   :  { %971 = vadd.xlane.f32.xlu1 %v970_v11  ;;  %v1006_v11 = vld [vmem:[#allocation5] sm:$0xff] }
 0x222   :  { %v924_v12 = vpop.f32.mrf.mxu2 }
 0x223   :  { %v956_v13 = vpop.f32.mrf.mxu3  ;;  %v925_v27 = vadd.f32 %v924_v12, %v874_v23  ;;  %v1007_v12 = vld [vmem:[#allocation5 + $0x8] sm:$0xff] }
 0x224   :  { %v957_v15 = vadd.f32 %v956_v13, %v879_v14 }
 0x225   :  { %v964_v30 = vmax.f32 %v925_v27, 0.0 }
 0x226   :  { %v967_v16 = vmax.f32 %v957_v15, 0.0 }
 0x227   :  { %v973_v31 = vadd.f32 %v965_v29, %v964_v30 }
 0x22a   :  { %v927_v62 = vpop.f32.mrf.mxu2 }
 0x22b   :  { %v928_v61 = vadd.f32 %v927_v62, %v879_v14  ;;  %v959_v18 = vpop.f32.mrf.mxu3 }
 0x22c   :  { %v960_v20 = vadd.f32 %v959_v18, %v884_v34 }
 0x22d   :  { %v966_v17 = vmax.f32 %v928_v61, 0.0 }
 0x22e   :  { %v969_v24 = vmax.f32 %v960_v20, 0.0 }
 0x22f   :  { %v976_v19 = vadd.f32 %v967_v16, %v966_v17 }
 0x231   :  { %977 = vadd.xlane.f32.xlu2 %v976_v19 }
 0x232   :  { %v930_v21 = vpop.f32.mrf.mxu2 }
 0x233   :  { %v931_v22 = vadd.f32 %v930_v21, %v884_v34  ;;  %v531_v34 = vadd.f32 %v1122_v33, %v530_v39 }
 0x235   :  { %v968_v25 = vmax.f32 %v931_v22, 0.0  ;;  %v533_v42 = vsel %vm532_vm0, %v1122_v33, %v531_v34 }
 0x237   :  { %v979_v28 = vadd.f32 %v969_v24, %v968_v25 }
 0x239   :  { %980 = vadd.xlane.f32.xlu2 %v979_v28 }
 0x241   :  { %974 = vadd.xlane.f32.xlu2 %v973_v31 }
 0x24f   :  { %v520_v37 = vpop.xlane.xlu1 %519 }
 0x250   :  { %v535_v59 = vmul.f32 %v533_v42, %v520_v37 }
 0x252   :  { %v989_v3 = vmul.f32 %v1119_v47, %v535_v59 }
 0x257   :  { %v523_v40 = vpop.xlane.xlu0 %522 }
 0x258   :  { %v536_v43 = vmul.f32 %v533_v42, %v523_v40 }
 0x25a   :  { %v990_v50 = vmul.f32 %v1119_v47, %v536_v43 }
 0x25f   :  { %v526_v41 = vpop.xlane.xlu1 %525  ;;  %v517_v57 = vpop.xlane.xlu0 %516 }
 0x260   :  { %v537_v44 = vmul.f32 %v533_v42, %v526_v41  ;;  %v534_v63 = vmul.f32 %v533_v42, %v517_v57 }
 0x262   :  { %v991_v54 = vmul.f32 %v1119_v47, %v537_v44  ;;  %v988_v52 = vmul.f32 %v1119_v47, %v534_v63 }
 0x294   :  { %v972_v56 = vpop.xlane.xlu1 %971 }
 0x295   :  { %v982_v60 = vmul.f32 %v972_v56, %v533_v42 }
 0x297   :  { %v994_v4 = vmul.f32 %v1120_v48, %v982_v60 }
 0x299   :  { %v998_v7 = vadd.f32 %v994_v4, %v988_v52 }
 0x2a4   :  { %v978_v10 = vpop.xlane.xlu2 %977 }
 0x2a5   :  { %v984_v45 = vmul.f32 %v978_v10, %v533_v42 }
 0x2a7   :  { %v996_v36 = vmul.f32 %v1120_v48, %v984_v45 }
 0x2a9   :  { %v1000_v0 = vadd.f32 %v996_v36, %v990_v50 }
 0x2ac   :  { %v981_v46 = vpop.xlane.xlu2 %980 }
 0x2ad   :  { %v985_v49 = vmul.f32 %v981_v46, %v533_v42 }
 0x2af   :  { %v997_v55 = vmul.f32 %v1120_v48, %v985_v49 }
 0x2b1   :  { %v1001_v58 = vadd.f32 %v997_v55, %v991_v54 }
 0x2b3   :  { %1023 = vmatpush.msrb.mxu0 %v1001_v58  ;;  %1084 = vmatpush.msrb.mxu1 %v1001_v58 }
 0x2b4   :  { %v975_v1 = vpop.xlane.xlu2 %974 }
 0x2b5   :  { %v983_v2 = vmul.f32 %v975_v1, %v533_v42  ;;  %1024 = vmatpush.msrb.mxu0 %v1000_v0  ;;  %1085 = vmatpush.msrb.mxu1 %v1000_v0 }
 0x2b7   :  { %v995_v5 = vmul.f32 %v1120_v48, %v983_v2 }
 0x2b9   :  { %v999_v6 = vadd.f32 %v995_v5, %v989_v3 }
 0x2bb   :  { %1025 = vmatpush.msrb.mxu0 %v999_v6  ;;  %1086 = vmatpush.msrb.mxu1 %v999_v6 }
 0x2bd   :  { %1026 = vmatpush.msrb.mxu0 %v998_v7  ;;  %1087 = vmatpush.msrb.mxu1 %v998_v7 }
 0x2bf   :  { %1027 = vmatpush.msrb.mxu0 %v1005_v8  ;;  %1088 = vmatpush.msrb.mxu1 %v1005_v8 }
 0x2c1   :  { %1028 = vmatpush.msrb.mxu0 %v1004_v51  ;;  %1089 = vmatpush.msrb.mxu1 %v1004_v51 }
 0x2c3   :  { %1029 = vmatpush.msrb.mxu0 %v1003_v9  ;;  %1090 = vmatpush.msrb.mxu1 %v1003_v9 }
 0x2c5   :  { %1030 = vmatpush.msrb.mxu0 %v1002_v53  ;;  %1091 = vmatpush.msrb.mxu1 %v1002_v53 }
 0x2c6   :  { %1082 = vmatmul.msk.f32.vlgmr.msrb.gmra.mxu0 %vm1008_vm4, %v1006_v11  ;;  %1083 = vmatmul.msk.f32.vlgmr.msrb.gmra.mxu1 %vm1008_vm4, %v1007_v12 }
 0x343   :  { %v1032_v13 = vpop.f32.mrf.mxu0  ;;  %v1035_v14 = vpop.f32.mrf.mxu1 }
 0x344   :  { %1038 = vst.msk [vmem:[%s1576_s7] sm:$0xff] %vm128_vm2, %v1032_v13 }
 0x345   :  { %1039 = vst.msk [vmem:[%s1576_s7 + $0x8] sm:$0xff] %vm128_vm2, %v1035_v14 }
 0x346   :  { %1044 = vsyncpa [#allocation4], 1 }
 0x347   :  { %1045 = vsyncpa [#allocation6], 1 }

</bundles_post_ra>
